<compile_context>
chip_gen: v7x
topology: tpu7x:2x2x1
jax: 0.10.0
libtpu: 0.0.40
codegen_flags: <defaults>
</compile_context>

<pallas_src>
import functools

import jax
import jax.numpy as jnp
from jax.experimental import pallas as pl
from jax.experimental.pallas import tpu as pltpu


# ----------------------------------------------------------------------------
# Pallas kernel
# ----------------------------------------------------------------------------
def _pnet_kernel(dims, alpha_ref, x_ref,
                 w1_ref, t1_ref, sr_ref,
                 w2_ref, t2_ref,
                 w3_ref, t3_ref,
                 sf_ref, who_ref, bho_ref,
                 out_ref):
    bf16 = jnp.bfloat16
    c1, w1 = dims['C1'], dims['W1']

    def conv(xb, w_ref):
        # xb: (R + K - 1, Kin) bf16; w_ref: (K, Kin, Nout) bf16 row taps.
        # kx taps (and BN scale) are folded into the weights, so each conv is
        # just one matmul per ky over the full row width.
        k = w_ref.shape[0]
        r = xb.shape[0] - (k - 1)
        acc = jnp.zeros((r, w_ref.shape[2]), jnp.float32)
        for ky in range(k):
            acc = acc + jnp.dot(xb[ky:ky + r, :], w_ref[ky],
                                preferred_element_type=jnp.float32)
        return acc

    def shift_prelu(y, t_ref, a):
        # BN scale lives in the conv weights; only shift + PReLU remain (f32
        # elementwise — v5e has no bf16 VPU).
        y = y + t_ref[...]
        return jnp.maximum(y, 0.0) + a * jnp.minimum(y, 0.0)

    # conv1 (3->10, 3x3, pad=1 baked into the lane-padded input) + BN1 + PReLU1
    x = x_ref[...]                                      # bf16, no cast
    h = shift_prelu(conv(x, w1_ref), t1_ref, alpha_ref[0])

    # MaxPool2d(3, 2), separable: 3-wide column max, then 3-tall row max.
    # Stride-2 rows + image-boundary compaction via one sr matmul; the
    # stride-2 column subsampling is folded into conv2's weights.
    wm = w1 - 2
    cm = jnp.maximum(jnp.maximum(h[:, 0:wm * c1],
                                 h[:, c1:(1 + wm) * c1]),
                     h[:, 2 * c1:(2 + wm) * c1])
    rr = cm.shape[0] - 2
    rm = jnp.maximum(jnp.maximum(cm[0:rr], cm[1:rr + 1]), cm[2:rr + 2])
    p = jnp.dot(sr_ref[...], rm.astype(bf16), preferred_element_type=jnp.float32)

    # conv2 (10->16, 3x3 valid; pool column stride folded in) + BN2 + PReLU2
    h = shift_prelu(conv(p.astype(bf16), w2_ref), t2_ref, alpha_ref[1])

    # conv3 (16->32, 3x3 valid) + BN3 + PReLU3
    h = shift_prelu(conv(h.astype(bf16), w3_ref), t3_ref, alpha_ref[2])

    # Compact to the valid rows of every image, then the three 1x1 heads fused
    # into one matmul; single lane-dense (rows, 128) bf16 store.  Sigmoid /
    # head split happen in the wrapper.
    hc = jnp.dot(sf_ref[...], h.astype(bf16), preferred_element_type=jnp.float32)
    out = jnp.dot(hc.astype(bf16), who_ref[...],
                  preferred_element_type=jnp.float32)
    out_ref[...] = (out + bho_ref[...]).astype(out_ref.dtype)


# ----------------------------------------------------------------------------
# Wrapper glue: parameter packing into the (rows, W*C) layout
# ----------------------------------------------------------------------------
def _conv_rowtaps(w, wo, *, win=None, stride=1, scale=None, pad_rows_to=None):
    """torch (Cout, Cin, K, K) -> (K, win*Cin, wo*Cout) row-tap weights.

    The kx taps are folded in: row tap ky maps the full-width input row
    (win positions, channels fastest) to all wo output positions at once.
    `stride` samples input positions stride*(j+kx) (folds the pool's stride-2
    column subsampling).  Optional per-output-channel `scale` (folded BN) is
    applied in f32 before any bf16 cast by the caller.
    """
    cout, cin, k, _ = w.shape
    if win is None:
        win = wo + k - 1
    wk = jnp.transpose(w, (2, 3, 1, 0)).astype(jnp.float32)     # (K, K, Cin, Cout)
    if scale is not None:
        wk = wk * scale[None, None, None, :]
    jj = jnp.arange(wo)
    taps = []
    for ky in range(k):
        t = jnp.zeros((win * cin, wo * cout), jnp.float32)
        for kx in range(k):
            pos = stride * (jj + kx)
            assert int(stride * (wo - 1 + kx)) < win, "conv row-tap out of range"
            sel = jnp.zeros((win, wo), jnp.float32).at[pos, jj].set(1.0)
            t = t + jnp.kron(sel, wk[ky, kx])
        taps.append(t)
    out = jnp.stack(taps, 0)
    if pad_rows_to is not None and pad_rows_to > win * cin:
        out = jnp.pad(out, ((0, 0), (0, pad_rows_to - win * cin), (0, 0)))
    return out


def _bn_fold(bn, bias, eps=1e-5):
    # Eval-mode BN folded: per-channel scale (goes into the conv weights) and
    # shift (absorbs the conv bias).
    scale = bn['gamma'] / jnp.sqrt(bn['var'] + eps)
    shift = bn['beta'] + (bias - bn['mean']) * scale
    return scale, shift


def _row_select(b, nsel, blk, stride, lost, dtype=jnp.bfloat16):
    # (b*nsel, b*blk - lost) one-hot rows: row (bi*nsel + j) -> col
    # (bi*blk + stride*j).  `lost` = rows consumed by the valid 3-tall stages
    # preceding the selection (2 per stage).
    rows, cols = b * nsel, b * blk - lost
    r = jnp.arange(rows)
    ci = (r // nsel) * blk + stride * (r % nsel)
    assert (b - 1) * blk + stride * (nsel - 1) < cols, "row selection misaligned"
    return jnp.zeros((rows, cols), dtype).at[r, ci].set(1.0)


def _full_spec(a):
    zeros = (0,) * a.ndim
    return pl.BlockSpec(a.shape, lambda i, z=zeros: z)


def pnet_forward(x, params, block_b=8):
    n, cin, h, w = x.shape
    f32, bf16 = jnp.float32, jnp.bfloat16

    b = min(block_b, n)                            # images per grid step
    n_pad = ((n + b - 1) // b) * b
    nb = n_pad // b

    c1, c2, c3, cho = 10, 16, 32, 15               # 15 = 1 + 4 + 10 head channels
    h1, w1 = h, w                                  # conv1 output (pad=1, stride=1)
    hp, wp = (h1 - 3) // 2 + 1, (w1 - 3) // 2 + 1  # MaxPool2d(3, 2)
    h2c, w2c = hp - 2, wp - 2                      # conv2 (3x3 valid)
    h3c, w3c = h2c - 2, w2c - 2                    # conv3 (3x3 valid)

    lanes_in = -(-((w + 2) * cin) // 128) * 128    # lane-dense padded input width
    lanes_out = -(-(w3c * cho) // 128) * 128       # lane-dense fused output width

    # NCHW -> NHWC, zero-pad H/W by 1 (conv1 padding=1), pad batch to a
    # multiple of b, stack batch blocks along rows, pad lanes to 128, bf16.
    xz = jnp.transpose(x, (0, 2, 3, 1))
    xz = jnp.pad(xz, ((0, n_pad - n), (1, 1), (1, 1), (0, 0)))
    x2 = xz.reshape(n_pad * (h + 2), (w + 2) * cin)
    x2 = jnp.pad(x2, ((0, 0), (0, lanes_in - (w + 2) * cin))).astype(bf16)

    # BN folded: scale into weights (f32, before bf16 cast); shift kept as row.
    s1, t1v = _bn_fold(params['bn1'], params['b1'])
    s2, t2v = _bn_fold(params['bn2'], params['b2'])
    s3, t3v = _bn_fold(params['bn3'], params['b3'])
    t1 = jnp.tile(t1v, w1)[None, :].astype(f32)
    t2 = jnp.tile(t2v, w2c)[None, :].astype(f32)
    t3 = jnp.tile(t3v, w3c)[None, :].astype(f32)

    # kx-folded row-tap weights (one matmul per ky inside the kernel).
    wk1 = _conv_rowtaps(params['w1'], w1, win=w1 + 2, scale=s1,
                        pad_rows_to=lanes_in).astype(bf16)
    # conv2 also folds the stride-2 pool column subsampling (replaces sc).
    wk2 = _conv_rowtaps(params['w2'], w2c, win=w1 - 2, stride=2,
                        scale=s2).astype(bf16)
    wk3 = _conv_rowtaps(params['w3'], w3c, scale=s3).astype(bf16)

    # Three 1x1 heads fused into one lane-padded weight/bias: [cond|box|ldm].
    w_heads = jnp.concatenate([params['wo1'], params['wo2'], params['wo3']], 0)
    b_heads = jnp.concatenate([params['bo1'], params['bo2'], params['bo3']], 0)
    who = _conv_rowtaps(w_heads, w3c)[0]                        # (w3c*32, w3c*15)
    who = jnp.pad(who, ((0, 0), (0, lanes_out - w3c * cho))).astype(bf16)
    bho = jnp.pad(jnp.tile(b_heads, w3c),
                  (0, lanes_out - w3c * cho))[None, :].astype(f32)

    # Row-selection matrices: stride-2 pool rows (+ image-boundary compaction)
    # and valid-row compaction after conv3.  lost=4 <- two 3-tall valid stages
    # (conv1+pool, conv2+conv3) each drop 2 rows.
    sr = _row_select(b, hp, h1 + 2, 2, lost=4)     # (b*hp, b*(h1+2)-4)
    sf = _row_select(b, h3c, hp, 1, lost=4)        # (b*h3c, b*hp-4)

    alpha = params['prelu'].astype(f32)
    dims = dict(C1=c1, W1=w1)
    kernel = functools.partial(_pnet_kernel, dims)

    operands = (alpha, x2, wk1, t1, sr, wk2, t2, wk3, t3, sf, who, bho)

    rows_in, rows_out, rows_sr = b * (h + 2), b * h3c, b * hp
    in_specs = [pl.BlockSpec(memory_space=pltpu.MemorySpace.SMEM),         # alpha
                pl.BlockSpec((rows_in, lanes_in), lambda i: (i, 0))]        # x blk
    in_specs += [_full_spec(a) for a in operands[2:]]

    # Honest scoped-VMEM request from the actual per-step footprint, plus an
    # advisory cost estimate so XLA can schedule the packing ops around the
    # (tiny) kernel.
    const_bytes = sum(int(a.size) * a.dtype.itemsize for a in operands[2:])
    blk_bytes = rows_in * lanes_in * 2 + rows_out * lanes_out * 2 + const_bytes
    act_bytes = 4 * (rows_in * w1 * c1 + rows_in * (w1 - 2) * c1)
    need = 2 * blk_bytes + 8 * act_bytes + (2 << 20)
    vmem_limit = int(min(64 << 20, max(8 << 20, -(-need // (1 << 20)) * (1 << 20))))

    flops_blk = 2 * (3 * (rows_in - 2) * lanes_in * (w1 * c1)
                     + rows_sr * (rows_in - 4) * ((w1 - 2) * c1)
                     + 3 * (rows_sr - 2) * ((w1 - 2) * c1) * (w2c * c2)
                     + 3 * (rows_sr - 4) * (w2c * c2) * (w3c * c3)
                     + rows_out * (rows_sr - 4) * (w3c * c3)
                     + rows_out * (w3c * c3) * lanes_out)
    bytes_accessed = int(x2.size * 2 + n_pad * h3c * lanes_out * 2 + const_bytes)

    fused = pl.pallas_call(
        kernel,
        grid=(nb,),
        in_specs=in_specs,
        out_specs=pl.BlockSpec((rows_out, lanes_out), lambda i: (i, 0)),
        out_shape=jax.ShapeDtypeStruct((n_pad * h3c, lanes_out), bf16),
        compiler_params=pltpu.CompilerParams(
            dimension_semantics=("parallel",),     # nb>=2 -> both TCs on v7x
            vmem_limit_bytes=vmem_limit),
        cost_estimate=pl.CostEstimate(flops=int(nb * flops_blk),
                                      transcendentals=0,
                                      bytes_accessed=bytes_accessed),
    )(*operands)

    # (N_pad*h3c, lanes) bf16 -> (N, 15, h3c, w3c) f32; split heads; sigmoid.
    fused = fused[:, :w3c * cho].astype(f32).reshape(n_pad, h3c, w3c, cho)[:n]
    fused = jnp.transpose(fused, (0, 3, 1, 2))
    cond = jax.nn.sigmoid(fused[:, 0:1])
    box = fused[:, 1:5]
    ldm = fused[:, 5:15]
    return cond, box, ldm


# ----------------------------------------------------------------------------
# Deterministic parameter init (shapes from PNet.__init__)
# ----------------------------------------------------------------------------
def init_params(key):
    ks = jax.random.split(key, 16)
    nrm = lambda k, shp, s=0.1: s * jax.random.normal(k, shp, jnp.float32)
    p = {}
    p['w1'], p['b1'] = nrm(ks[0], (10, 3, 3, 3)), nrm(ks[1], (10,))
    p['w2'], p['b2'] = nrm(ks[2], (16, 10, 3, 3)), nrm(ks[3], (16,))
    p['w3'], p['b3'] = nrm(ks[4], (32, 16, 3, 3)), nrm(ks[5], (32,))
    p['wo1'], p['bo1'] = nrm(ks[6], (1, 32, 1, 1)), nrm(ks[7], (1,))
    p['wo2'], p['bo2'] = nrm(ks[8], (4, 32, 1, 1)), nrm(ks[9], (4,))
    p['wo3'], p['bo3'] = nrm(ks[10], (10, 32, 1, 1)), nrm(ks[11], (10,))
    for i, c in zip((1, 2, 3), (10, 16, 32)):
        kg, kb = jax.random.split(ks[11 + i])
        p[f'bn{i}'] = dict(
            gamma=1.0 + 0.1 * jax.random.normal(kg, (c,), jnp.float32),
            beta=0.1 * jax.random.normal(kb, (c,), jnp.float32),
            mean=jnp.zeros((c,), jnp.float32),     # PyTorch default running stats
            var=jnp.ones((c,), jnp.float32))
    p['prelu'] = jnp.full((3,), 0.25, jnp.float32)  # nn.PReLU() default alpha
    return p


# ----------------------------------------------------------------------------
# Pure-JAX reference (eval-mode BN) for a correctness check
# ----------------------------------------------------------------------------
def pnet_reference(x, params, eps=1e-5):
    def conv(x, w, b, pad):
        y = jax.lax.conv_general_dilated(
            x, w, (1, 1), [(pad, pad), (pad, pad)],
            dimension_numbers=('NCHW', 'OIHW', 'NCHW'))
        return y + b[None, :, None, None]

    def bn(x, q):
        s = q['gamma'] / jnp.sqrt(q['var'] + eps)
        return ((x - q['mean'][None, :, None, None]) * s[None, :, None, None]
                + q['beta'][None, :, None, None])

    def prelu(x, a):
        return jnp.where(x > 0, x, a * x)

    a = params['prelu']
    h = prelu(bn(conv(x, params['w1'], params['b1'], 1), params['bn1']), a[0])
    h = jax.lax.reduce_window(h, -jnp.inf, jax.lax.max,
                              (1, 1, 3, 3), (1, 1, 2, 2), 'VALID')
    h = prelu(bn(conv(h, params['w2'], params['b2'], 0), params['bn2']), a[1])
    h = prelu(bn(conv(h, params['w3'], params['b3'], 0), params['bn3']), a[2])
    cond = jax.nn.sigmoid(conv(h, params['wo1'], params['bo1'], 0))
    box = conv(h, params['wo2'], params['bo2'], 0)
    ldm = conv(h, params['wo3'], params['bo3'], 0)
    return cond, box, ldm


if __name__ == "__main__":
    key = jax.random.PRNGKey(0)
    kx, kp = jax.random.split(key)
    # 16 RGB images of 16x16 -> two grid steps of 8-image batch blocks
    # (keeps >=2 parallel steps so both v7x TensorCores have work).
    x = jax.random.normal(kx, (16, 3, 16, 16), jnp.float32)
    params = init_params(kp)

    outs = pnet_forward(x, params, block_b=8)
    outs = jax.block_until_ready(outs)

    refs = pnet_reference(x, params)
    for name, o, r in zip(("cond", "boxOffSet", "ldMoffSet"), outs, refs):
        assert o.shape == r.shape, (name, o.shape, r.shape)
        assert bool(jnp.allclose(o, r, atol=5e-2, rtol=5e-2)), (
            name, float(jnp.max(jnp.abs(o - r))))
    print("KERNEL_OK")
</pallas_src>

<mosaic_0001>
module attributes {stable_mosaic.version = 11 : i64} {
  func.func @_pnet_kernel(%arg0: i32, %arg1: memref<3xf32, #tpu.memory_space<smem>>, %arg2: memref<144x128xbf16, #tpu.memory_space<vmem>>, %arg3: memref<3x128x160xbf16, #tpu.memory_space<vmem>>, %arg4: memref<1x160xf32, #tpu.memory_space<vmem>>, %arg5: memref<56x140xbf16, #tpu.memory_space<vmem>>, %arg6: memref<3x140x80xbf16, #tpu.memory_space<vmem>>, %arg7: memref<1x80xf32, #tpu.memory_space<vmem>>, %arg8: memref<3x80x96xbf16, #tpu.memory_space<vmem>>, %arg9: memref<1x96xf32, #tpu.memory_space<vmem>>, %arg10: memref<24x52xbf16, #tpu.memory_space<vmem>>, %arg11: memref<96x128xbf16, #tpu.memory_space<vmem>>, %arg12: memref<1x128xf32, #tpu.memory_space<vmem>>, %arg13: memref<24x128xbf16, #tpu.memory_space<vmem>>) attributes {dimension_semantics = [#tpu.dimension_semantics<parallel>], iteration_bounds = array<i64: 2>, scalar_prefetch = 0 : i64, scratch_operands = 0 : i64, tpu.core_type = #tpu.core_type<tc>, window_params = [{transform_indices = @transform_0, window_bounds = array<i64: 3>}, {transform_indices = @transform_1, window_bounds = array<i64: 144, 128>}, {pipeline_mode = #tpu.pipeline_mode<synchronous>, transform_indices = @transform_2, window_bounds = array<i64: 3, 128, 160>}, {pipeline_mode = #tpu.pipeline_mode<synchronous>, transform_indices = @transform_3, window_bounds = array<i64: 1, 160>}, {pipeline_mode = #tpu.pipeline_mode<synchronous>, transform_indices = @transform_4, window_bounds = array<i64: 56, 140>}, {pipeline_mode = #tpu.pipeline_mode<synchronous>, transform_indices = @transform_5, window_bounds = array<i64: 3, 140, 80>}, {pipeline_mode = #tpu.pipeline_mode<synchronous>, transform_indices = @transform_6, window_bounds = array<i64: 1, 80>}, {pipeline_mode = #tpu.pipeline_mode<synchronous>, transform_indices = @transform_7, window_bounds = array<i64: 3, 80, 96>}, {pipeline_mode = #tpu.pipeline_mode<synchronous>, transform_indices = @transform_8, window_bounds = array<i64: 1, 96>}, {pipeline_mode = #tpu.pipeline_mode<synchronous>, transform_indices = @transform_9, window_bounds = array<i64: 24, 52>}, {pipeline_mode = #tpu.pipeline_mode<synchronous>, transform_indices = @transform_10, window_bounds = array<i64: 96, 128>}, {pipeline_mode = #tpu.pipeline_mode<synchronous>, transform_indices = @transform_11, window_bounds = array<i64: 1, 128>}, {transform_indices = @transform_12, window_bounds = array<i64: 24, 128>}]} {
    %c0 = arith.constant 0 : index
    %c0_0 = arith.constant 0 : index
    %0 = vector.load %arg2[%c0, %c0_0] : memref<144x128xbf16, #tpu.memory_space<vmem>>, vector<144x128xbf16>
    %cst = arith.constant 0.000000e+00 : f32
    %1 = vector.broadcast %cst : f32 to vector<142x160xf32>
    %2 = vector.extract_strided_slice %0 {offsets = [0, 0], sizes = [142, 128], strides = [1, 1]} : vector<144x128xbf16> to vector<142x128xbf16>
    %c0_1 = arith.constant 0 : index
    %c0_2 = arith.constant 0 : index
    %c0_3 = arith.constant 0 : index
    %3 = vector.load %arg3[%c0_1, %c0_2, %c0_3] : memref<3x128x160xbf16, #tpu.memory_space<vmem>>, vector<1x128x160xbf16>
    %4 = vector.shape_cast %3 : vector<1x128x160xbf16> to vector<128x160xbf16>
    %cst_4 = arith.constant dense<0.000000e+00> : vector<142x160xf32>
    %5 = tpu.matmul %2, %4, %cst_4 {dimension_numbers = #tpu.dot_dimension_numbers<[1], [0], [0], [1], [0, 0, 1, 1], [], []>} : vector<142x128xbf16>, vector<128x160xbf16>, vector<142x160xf32> -> vector<142x160xf32>
    %6 = arith.addf %1, %5 : vector<142x160xf32>
    %7 = vector.extract_strided_slice %0 {offsets = [1, 0], sizes = [142, 128], strides = [1, 1]} : vector<144x128xbf16> to vector<142x128xbf16>
    %c1 = arith.constant 1 : index
    %c0_5 = arith.constant 0 : index
    %c0_6 = arith.constant 0 : index
    %8 = vector.load %arg3[%c1, %c0_5, %c0_6] : memref<3x128x160xbf16, #tpu.memory_space<vmem>>, vector<1x128x160xbf16>
    %9 = vector.shape_cast %8 : vector<1x128x160xbf16> to vector<128x160xbf16>
    %cst_7 = arith.constant dense<0.000000e+00> : vector<142x160xf32>
    %10 = tpu.matmul %7, %9, %cst_7 {dimension_numbers = #tpu.dot_dimension_numbers<[1], [0], [0], [1], [0, 0, 1, 1], [], []>} : vector<142x128xbf16>, vector<128x160xbf16>, vector<142x160xf32> -> vector<142x160xf32>
    %11 = arith.addf %6, %10 : vector<142x160xf32>
    %12 = vector.extract_strided_slice %0 {offsets = [2, 0], sizes = [142, 128], strides = [1, 1]} : vector<144x128xbf16> to vector<142x128xbf16>
    %c2 = arith.constant 2 : index
    %c0_8 = arith.constant 0 : index
    %c0_9 = arith.constant 0 : index
    %13 = vector.load %arg3[%c2, %c0_8, %c0_9] : memref<3x128x160xbf16, #tpu.memory_space<vmem>>, vector<1x128x160xbf16>
    %14 = vector.shape_cast %13 : vector<1x128x160xbf16> to vector<128x160xbf16>
    %cst_10 = arith.constant dense<0.000000e+00> : vector<142x160xf32>
    %15 = tpu.matmul %12, %14, %cst_10 {dimension_numbers = #tpu.dot_dimension_numbers<[1], [0], [0], [1], [0, 0, 1, 1], [], []>} : vector<142x128xbf16>, vector<128x160xbf16>, vector<142x160xf32> -> vector<142x160xf32>
    %16 = arith.addf %11, %15 : vector<142x160xf32>
    %c0_11 = arith.constant 0 : index
    %17 = memref.load %arg1[%c0_11] : memref<3xf32, #tpu.memory_space<smem>>
    %c0_12 = arith.constant 0 : index
    %c0_13 = arith.constant 0 : index
    %18 = vector.load %arg4[%c0_12, %c0_13] : memref<1x160xf32, #tpu.memory_space<vmem>>, vector<1x160xf32>
    %19 = vector.broadcast %18 : vector<1x160xf32> to vector<142x160xf32>
    %20 = arith.addf %16, %19 : vector<142x160xf32>
    %cst_14 = arith.constant 0.000000e+00 : f32
    %21 = vector.broadcast %cst_14 : f32 to vector<142x160xf32>
    %22 = arith.maximumf %20, %21 : vector<142x160xf32>
    %cst_15 = arith.constant 0.000000e+00 : f32
    %23 = vector.broadcast %cst_15 : f32 to vector<142x160xf32>
    %24 = arith.minimumf %20, %23 : vector<142x160xf32>
    %25 = vector.broadcast %17 : f32 to vector<142x160xf32>
    %26 = arith.mulf %25, %24 : vector<142x160xf32>
    %27 = arith.addf %22, %26 : vector<142x160xf32>
    %28 = vector.extract_strided_slice %27 {offsets = [0, 0], sizes = [142, 140], strides = [1, 1]} : vector<142x160xf32> to vector<142x140xf32>
    %29 = vector.extract_strided_slice %27 {offsets = [0, 10], sizes = [142, 140], strides = [1, 1]} : vector<142x160xf32> to vector<142x140xf32>
    %30 = arith.maximumf %28, %29 : vector<142x140xf32>
    %31 = vector.extract_strided_slice %27 {offsets = [0, 20], sizes = [142, 140], strides = [1, 1]} : vector<142x160xf32> to vector<142x140xf32>
    %32 = arith.maximumf %30, %31 : vector<142x140xf32>
    %33 = vector.extract_strided_slice %32 {offsets = [0, 0], sizes = [140, 140], strides = [1, 1]} : vector<142x140xf32> to vector<140x140xf32>
    %34 = vector.extract_strided_slice %32 {offsets = [1, 0], sizes = [140, 140], strides = [1, 1]} : vector<142x140xf32> to vector<140x140xf32>
    %35 = arith.maximumf %33, %34 : vector<140x140xf32>
    %36 = vector.extract_strided_slice %32 {offsets = [2, 0], sizes = [140, 140], strides = [1, 1]} : vector<142x140xf32> to vector<140x140xf32>
    %37 = arith.maximumf %35, %36 : vector<140x140xf32>
    %c0_16 = arith.constant 0 : index
    %c0_17 = arith.constant 0 : index
    %38 = vector.load %arg5[%c0_16, %c0_17] : memref<56x140xbf16, #tpu.memory_space<vmem>>, vector<56x140xbf16>
    %39 = arith.truncf %37 : vector<140x140xf32> to vector<140x140xbf16>
    %cst_18 = arith.constant dense<0.000000e+00> : vector<56x140xf32>
    %40 = tpu.matmul %38, %39, %cst_18 {dimension_numbers = #tpu.dot_dimension_numbers<[1], [0], [0], [1], [0, 0, 1, 1], [], []>} : vector<56x140xbf16>, vector<140x140xbf16>, vector<56x140xf32> -> vector<56x140xf32>
    %41 = arith.truncf %40 : vector<56x140xf32> to vector<56x140xbf16>
    %cst_19 = arith.constant 0.000000e+00 : f32
    %42 = vector.broadcast %cst_19 : f32 to vector<54x80xf32>
    %43 = vector.extract_strided_slice %41 {offsets = [0, 0], sizes = [54, 140], strides = [1, 1]} : vector<56x140xbf16> to vector<54x140xbf16>
    %c0_20 = arith.constant 0 : index
    %c0_21 = arith.constant 0 : index
    %c0_22 = arith.constant 0 : index
    %44 = vector.load %arg6[%c0_20, %c0_21, %c0_22] : memref<3x140x80xbf16, #tpu.memory_space<vmem>>, vector<1x140x80xbf16>
    %45 = vector.shape_cast %44 : vector<1x140x80xbf16> to vector<140x80xbf16>
    %cst_23 = arith.constant dense<0.000000e+00> : vector<54x80xf32>
    %46 = tpu.matmul %43, %45, %cst_23 {dimension_numbers = #tpu.dot_dimension_numbers<[1], [0], [0], [1], [0, 0, 1, 1], [], []>} : vector<54x140xbf16>, vector<140x80xbf16>, vector<54x80xf32> -> vector<54x80xf32>
    %47 = arith.addf %42, %46 : vector<54x80xf32>
    %48 = vector.extract_strided_slice %41 {offsets = [1, 0], sizes = [54, 140], strides = [1, 1]} : vector<56x140xbf16> to vector<54x140xbf16>
    %c1_24 = arith.constant 1 : index
    %c0_25 = arith.constant 0 : index
    %c0_26 = arith.constant 0 : index
    %49 = vector.load %arg6[%c1_24, %c0_25, %c0_26] : memref<3x140x80xbf16, #tpu.memory_space<vmem>>, vector<1x140x80xbf16>
    %50 = vector.shape_cast %49 : vector<1x140x80xbf16> to vector<140x80xbf16>
    %cst_27 = arith.constant dense<0.000000e+00> : vector<54x80xf32>
    %51 = tpu.matmul %48, %50, %cst_27 {dimension_numbers = #tpu.dot_dimension_numbers<[1], [0], [0], [1], [0, 0, 1, 1], [], []>} : vector<54x140xbf16>, vector<140x80xbf16>, vector<54x80xf32> -> vector<54x80xf32>
    %52 = arith.addf %47, %51 : vector<54x80xf32>
    %53 = vector.extract_strided_slice %41 {offsets = [2, 0], sizes = [54, 140], strides = [1, 1]} : vector<56x140xbf16> to vector<54x140xbf16>
    %c2_28 = arith.constant 2 : index
    %c0_29 = arith.constant 0 : index
    %c0_30 = arith.constant 0 : index
    %54 = vector.load %arg6[%c2_28, %c0_29, %c0_30] : memref<3x140x80xbf16, #tpu.memory_space<vmem>>, vector<1x140x80xbf16>
    %55 = vector.shape_cast %54 : vector<1x140x80xbf16> to vector<140x80xbf16>
    %cst_31 = arith.constant dense<0.000000e+00> : vector<54x80xf32>
    %56 = tpu.matmul %53, %55, %cst_31 {dimension_numbers = #tpu.dot_dimension_numbers<[1], [0], [0], [1], [0, 0, 1, 1], [], []>} : vector<54x140xbf16>, vector<140x80xbf16>, vector<54x80xf32> -> vector<54x80xf32>
    %57 = arith.addf %52, %56 : vector<54x80xf32>
    %c1_32 = arith.constant 1 : index
    %58 = memref.load %arg1[%c1_32] : memref<3xf32, #tpu.memory_space<smem>>
    %c0_33 = arith.constant 0 : index
    %c0_34 = arith.constant 0 : index
    %59 = vector.load %arg7[%c0_33, %c0_34] : memref<1x80xf32, #tpu.memory_space<vmem>>, vector<1x80xf32>
    %60 = vector.broadcast %59 : vector<1x80xf32> to vector<54x80xf32>
    %61 = arith.addf %57, %60 : vector<54x80xf32>
    %cst_35 = arith.constant 0.000000e+00 : f32
    %62 = vector.broadcast %cst_35 : f32 to vector<54x80xf32>
    %63 = arith.maximumf %61, %62 : vector<54x80xf32>
    %cst_36 = arith.constant 0.000000e+00 : f32
    %64 = vector.broadcast %cst_36 : f32 to vector<54x80xf32>
    %65 = arith.minimumf %61, %64 : vector<54x80xf32>
    %66 = vector.broadcast %58 : f32 to vector<54x80xf32>
    %67 = arith.mulf %66, %65 : vector<54x80xf32>
    %68 = arith.addf %63, %67 : vector<54x80xf32>
    %69 = arith.truncf %68 : vector<54x80xf32> to vector<54x80xbf16>
    %cst_37 = arith.constant 0.000000e+00 : f32
    %70 = vector.broadcast %cst_37 : f32 to vector<52x96xf32>
    %71 = vector.extract_strided_slice %69 {offsets = [0, 0], sizes = [52, 80], strides = [1, 1]} : vector<54x80xbf16> to vector<52x80xbf16>
    %c0_38 = arith.constant 0 : index
    %c0_39 = arith.constant 0 : index
    %c0_40 = arith.constant 0 : index
    %72 = vector.load %arg8[%c0_38, %c0_39, %c0_40] : memref<3x80x96xbf16, #tpu.memory_space<vmem>>, vector<1x80x96xbf16>
    %73 = vector.shape_cast %72 : vector<1x80x96xbf16> to vector<80x96xbf16>
    %cst_41 = arith.constant dense<0.000000e+00> : vector<52x96xf32>
    %74 = tpu.matmul %71, %73, %cst_41 {dimension_numbers = #tpu.dot_dimension_numbers<[1], [0], [0], [1], [0, 0, 1, 1], [], []>} : vector<52x80xbf16>, vector<80x96xbf16>, vector<52x96xf32> -> vector<52x96xf32>
    %75 = arith.addf %70, %74 : vector<52x96xf32>
    %76 = vector.extract_strided_slice %69 {offsets = [1, 0], sizes = [52, 80], strides = [1, 1]} : vector<54x80xbf16> to vector<52x80xbf16>
    %c1_42 = arith.constant 1 : index
    %c0_43 = arith.constant 0 : index
    %c0_44 = arith.constant 0 : index
    %77 = vector.load %arg8[%c1_42, %c0_43, %c0_44] : memref<3x80x96xbf16, #tpu.memory_space<vmem>>, vector<1x80x96xbf16>
    %78 = vector.shape_cast %77 : vector<1x80x96xbf16> to vector<80x96xbf16>
    %cst_45 = arith.constant dense<0.000000e+00> : vector<52x96xf32>
    %79 = tpu.matmul %76, %78, %cst_45 {dimension_numbers = #tpu.dot_dimension_numbers<[1], [0], [0], [1], [0, 0, 1, 1], [], []>} : vector<52x80xbf16>, vector<80x96xbf16>, vector<52x96xf32> -> vector<52x96xf32>
    %80 = arith.addf %75, %79 : vector<52x96xf32>
    %81 = vector.extract_strided_slice %69 {offsets = [2, 0], sizes = [52, 80], strides = [1, 1]} : vector<54x80xbf16> to vector<52x80xbf16>
    %c2_46 = arith.constant 2 : index
    %c0_47 = arith.constant 0 : index
    %c0_48 = arith.constant 0 : index
    %82 = vector.load %arg8[%c2_46, %c0_47, %c0_48] : memref<3x80x96xbf16, #tpu.memory_space<vmem>>, vector<1x80x96xbf16>
    %83 = vector.shape_cast %82 : vector<1x80x96xbf16> to vector<80x96xbf16>
    %cst_49 = arith.constant dense<0.000000e+00> : vector<52x96xf32>
    %84 = tpu.matmul %81, %83, %cst_49 {dimension_numbers = #tpu.dot_dimension_numbers<[1], [0], [0], [1], [0, 0, 1, 1], [], []>} : vector<52x80xbf16>, vector<80x96xbf16>, vector<52x96xf32> -> vector<52x96xf32>
    %85 = arith.addf %80, %84 : vector<52x96xf32>
    %c2_50 = arith.constant 2 : index
    %86 = memref.load %arg1[%c2_50] : memref<3xf32, #tpu.memory_space<smem>>
    %c0_51 = arith.constant 0 : index
    %c0_52 = arith.constant 0 : index
    %87 = vector.load %arg9[%c0_51, %c0_52] : memref<1x96xf32, #tpu.memory_space<vmem>>, vector<1x96xf32>
    %88 = vector.broadcast %87 : vector<1x96xf32> to vector<52x96xf32>
    %89 = arith.addf %85, %88 : vector<52x96xf32>
    %cst_53 = arith.constant 0.000000e+00 : f32
    %90 = vector.broadcast %cst_53 : f32 to vector<52x96xf32>
    %91 = arith.maximumf %89, %90 : vector<52x96xf32>
    %cst_54 = arith.constant 0.000000e+00 : f32
    %92 = vector.broadcast %cst_54 : f32 to vector<52x96xf32>
    %93 = arith.minimumf %89, %92 : vector<52x96xf32>
    %94 = vector.broadcast %86 : f32 to vector<52x96xf32>
    %95 = arith.mulf %94, %93 : vector<52x96xf32>
    %96 = arith.addf %91, %95 : vector<52x96xf32>
    %c0_55 = arith.constant 0 : index
    %c0_56 = arith.constant 0 : index
    %97 = vector.load %arg10[%c0_55, %c0_56] : memref<24x52xbf16, #tpu.memory_space<vmem>>, vector<24x52xbf16>
    %98 = arith.truncf %96 : vector<52x96xf32> to vector<52x96xbf16>
    %cst_57 = arith.constant dense<0.000000e+00> : vector<24x96xf32>
    %99 = tpu.matmul %97, %98, %cst_57 {dimension_numbers = #tpu.dot_dimension_numbers<[1], [0], [0], [1], [0, 0, 1, 1], [], []>} : vector<24x52xbf16>, vector<52x96xbf16>, vector<24x96xf32> -> vector<24x96xf32>
    %100 = arith.truncf %99 : vector<24x96xf32> to vector<24x96xbf16>
    %c0_58 = arith.constant 0 : index
    %c0_59 = arith.constant 0 : index
    %101 = vector.load %arg11[%c0_58, %c0_59] : memref<96x128xbf16, #tpu.memory_space<vmem>>, vector<96x128xbf16>
    %cst_60 = arith.constant dense<0.000000e+00> : vector<24x128xf32>
    %102 = tpu.matmul %100, %101, %cst_60 {dimension_numbers = #tpu.dot_dimension_numbers<[1], [0], [0], [1], [0, 0, 1, 1], [], []>} : vector<24x96xbf16>, vector<96x128xbf16>, vector<24x128xf32> -> vector<24x128xf32>
    %c0_61 = arith.constant 0 : index
    %c0_62 = arith.constant 0 : index
    %103 = vector.load %arg12[%c0_61, %c0_62] : memref<1x128xf32, #tpu.memory_space<vmem>>, vector<1x128xf32>
    %104 = vector.broadcast %103 : vector<1x128xf32> to vector<24x128xf32>
    %105 = arith.addf %102, %104 : vector<24x128xf32>
    %106 = arith.truncf %105 : vector<24x128xf32> to vector<24x128xbf16>
    %c0_63 = arith.constant 0 : index
    %c0_64 = arith.constant 0 : index
    %107 = vector.load %arg13[%c0_63, %c0_64] : memref<24x128xbf16, #tpu.memory_space<vmem>>, vector<24x128xbf16>
    tpu.vector_store %arg13[%c0_63, %c0_64], %106 {strides = array<i32>} : memref<24x128xbf16, #tpu.memory_space<vmem>>, vector<24x128xbf16>,
    return
  }
  func.func @transform_0(%arg0: i32) -> i32 {
    %c0_i32 = arith.constant 0 : i32
    %c0_i32_0 = arith.constant 0 : i32
    return %c0_i32 : i32
  }
  func.func @transform_1(%arg0: i32) -> (i32, i32) {
    %c0_i32 = arith.constant 0 : i32
    %c0_i32_0 = arith.constant 0 : i32
    return %arg0, %c0_i32 : i32, i32
  }
  func.func @transform_2(%arg0: i32) -> (i32, i32, i32) {
    %c0_i32 = arith.constant 0 : i32
    %c0_i32_0 = arith.constant 0 : i32
    %c0_i32_1 = arith.constant 0 : i32
    %c0_i32_2 = arith.constant 0 : i32
    return %c0_i32, %c0_i32_0, %c0_i32_1 : i32, i32, i32
  }
  func.func @transform_3(%arg0: i32) -> (i32, i32) {
    %c0_i32 = arith.constant 0 : i32
    %c0_i32_0 = arith.constant 0 : i32
    %c0_i32_1 = arith.constant 0 : i32
    return %c0_i32, %c0_i32_0 : i32, i32
  }
  func.func @transform_4(%arg0: i32) -> (i32, i32) {
    %c0_i32 = arith.constant 0 : i32
    %c0_i32_0 = arith.constant 0 : i32
    %c0_i32_1 = arith.constant 0 : i32
    return %c0_i32, %c0_i32_0 : i32, i32
  }
  func.func @transform_5(%arg0: i32) -> (i32, i32, i32) {
    %c0_i32 = arith.constant 0 : i32
    %c0_i32_0 = arith.constant 0 : i32
    %c0_i32_1 = arith.constant 0 : i32
    %c0_i32_2 = arith.constant 0 : i32
    return %c0_i32, %c0_i32_0, %c0_i32_1 : i32, i32, i32
  }
  func.func @transform_6(%arg0: i32) -> (i32, i32) {
    %c0_i32 = arith.constant 0 : i32
    %c0_i32_0 = arith.constant 0 : i32
    %c0_i32_1 = arith.constant 0 : i32
    return %c0_i32, %c0_i32_0 : i32, i32
  }
  func.func @transform_7(%arg0: i32) -> (i32, i32, i32) {
    %c0_i32 = arith.constant 0 : i32
    %c0_i32_0 = arith.constant 0 : i32
    %c0_i32_1 = arith.constant 0 : i32
    %c0_i32_2 = arith.constant 0 : i32
    return %c0_i32, %c0_i32_0, %c0_i32_1 : i32, i32, i32
  }
  func.func @transform_8(%arg0: i32) -> (i32, i32) {
    %c0_i32 = arith.constant 0 : i32
    %c0_i32_0 = arith.constant 0 : i32
    %c0_i32_1 = arith.constant 0 : i32
    return %c0_i32, %c0_i32_0 : i32, i32
  }
  func.func @transform_9(%arg0: i32) -> (i32, i32) {
    %c0_i32 = arith.constant 0 : i32
    %c0_i32_0 = arith.constant 0 : i32
    %c0_i32_1 = arith.constant 0 : i32
    return %c0_i32, %c0_i32_0 : i32, i32
  }
  func.func @transform_10(%arg0: i32) -> (i32, i32) {
    %c0_i32 = arith.constant 0 : i32
    %c0_i32_0 = arith.constant 0 : i32
    %c0_i32_1 = arith.constant 0 : i32
    return %c0_i32, %c0_i32_0 : i32, i32
  }
  func.func @transform_11(%arg0: i32) -> (i32, i32) {
    %c0_i32 = arith.constant 0 : i32
    %c0_i32_0 = arith.constant 0 : i32
    %c0_i32_1 = arith.constant 0 : i32
    return %c0_i32, %c0_i32_0 : i32, i32
  }
  func.func @transform_12(%arg0: i32) -> (i32, i32) {
    %c0_i32 = arith.constant 0 : i32
    %c0_i32_0 = arith.constant 0 : i32
    return %arg0, %c0_i32 : i32, i32
  }
}

</mosaic_0001>

<bundles_post_ra>
// kernel: tpu_custom_call.1
= control target key start
LH: loop header
LB: loop body
LE: loop exit
PB: predicated region body
PF: predicated region fallthrough
CT: control target
= control target key end

     0   :  { %s6111_s0 = inlined_call_operand.vmem [shape: f32[3], index: 0, kind: input, shape index: {}]   ;;  %s6112_s1 = inlined_call_operand.vmem [shape: bf16[288,128], index: 1, kind: input, shape index: {}]   ;;  %s6113_s2 = inlined_call_operand.vmem [shape: bf16[3,128,160], index: 2, kind: input, shape index: {}]   ;;  %s6114_s3 = inlined_call_operand.vmem [shape: f32[1,160], index: 3, kind: input, shape index: {}]   ;;  %s6115_s4 = inlined_call_operand.vmem [shape: bf16[56,140], index: 4, kind: input, shape index: {}]   ;;  %s6116_s5 = inlined_call_operand.vmem [shape: bf16[3,140,80], index: 5, kind: input, shape index: {}]   ;;  %s6117_s6 = inlined_call_operand.vmem [shape: f32[1,80], index: 6, kind: input, shape index: {}]   ;;  %s6118_s7 = inlined_call_operand.vmem [shape: bf16[3,80,96], index: 7, kind: input, shape index: {}]   ;;  %s6119_s8 = inlined_call_operand.vmem [shape: f32[1,96], index: 8, kind: input, shape index: {}]   ;;  %s6120_s9 = inlined_call_operand.vmem [shape: bf16[24,52], index: 9, kind: input, shape index: {}]   ;;  %s6121_s10 = inlined_call_operand.vmem [shape: bf16[96,128], index: 10, kind: input, shape index: {}]   ;;  %s6122_s11 = inlined_call_operand.vmem [shape: f32[1,128], index: 11, kind: input, shape index: {}]   ;;  %s6123_s12 = inlined_call_operand.hbm [shape: bf16[48,128], index: 12, kind: output, shape index: {}]  }
   0x1   :  { %6127 = sst [smem:[#allocation10_spill]] %s6111_s0 }
   0x2   :  { %17 = vsyncpa [#allocation4], 0 }
   0x3   :  { %18 = vsyncpa [#allocation3], 0 }
   0x4   :  { %20 = vsyncpa [#allocation3 + $0x1], 0  ;;  %s4664_s21 = smov 0   ;;  %s4666_s22 = smov 0  }
   0x5   :  { %s4668_s23 = smov 0   ;;  %s4670_s24 = smov 0  }
   0x6 LB: > { %6128 = sst [smem:[#allocation8_spill]] %s4586_s23  ;;  %s4685_s25 = sadd.s32 4294967295, %s4590_s24   ;;  %s4590_s24 = sphi %s4670_s24, %s6145_s24   ;;  %s4586_s23 = sphi %s4668_s23, %s6142_s23   ;;  %s4582_s22 = sphi %s4666_s22, %s6144_s22   ;;  %s4578_s21 = sphi %s4664_s21, %s6143_s21  }
   0x7   : > { %s3664_s26 = sadd.s32 4294967294, %s4590_s24   ;;  %s4689_s27 = sadd.s32 1, %s4590_s24  }
   0x8   : > { %s290_s28 = sadd.s32 1, %s4586_s23  ;;  %s287_s29 = ssub.s32 %s4590_s24, %s4689_s27 }
   0x9   : > { %p300_p0 = scmp.ne.s32.totalorder %s4586_s23, %s4582_s22  ;;  %p288_p1 = scmp.eq.s32.totalorder %s287_s29, 0 }
   0xa   : > { %p301_p2 = scmp.eq.s32.totalorder %s4685_s25, 1  ;;  %p306_p3 = scmp.ne.s32.totalorder %s4582_s22, %s4578_s21 }
   0xb   : > { %p307_p4 = scmp.eq.s32.totalorder %s3664_s26, 1  ;;  %p3665_p7 = scmp.ge.s32.totalorder %s4590_s24, 1 }
   0xc   : > { %s4700_s30 = scalar_select %p288_p1, %s4586_s23, %s290_s28  }
   0xd   : > { %p4702_p5 = por %p301_p2, %p300_p0  ;;  %p4706_p6 = por %p307_p4, %p306_p3 }
   0xe   : > { %6129 = sst [smem:[#allocation9_spill]] %s4700_s30  ;;  %p314_p8 = scmp.lt.s32.totalorder %s4590_s24, 3 }
   0xf   : > { %p4146_p9 = scmp.eq.s32.totalorder %s4685_s25, 0  ;;  %s6133_s0 = sld [smem:[#allocation10_spill]] }
  0x10   : > { %p4713_p10 = pnand %p3665_p7, %p314_p8 }
  0x12   : > { %p4138_p11 = pneg %p4713_p10 }
  0x14   : > { %p4139_p12 = pnand %p4146_p9, %p4138_p11 }
  0x15   : > { %s327_s18 = sshll.u32 %s6133_s0, 4  ;;  %s328_s18 = int_to_ptr.vmem [resolvable:$true] %s327_s18 }
  0x16   : > { %s4509_s19 = scalar_lea.vmem %s328_s18, 16  ;;  %p4511_p0 = pneg %p4139_p12 }
  0x17   : > { %p4510_p13 = scmp.ne.s32.totalorder %s328_s18, %s4509_s19  ;;  %p4517_p3 = scmp.lt.s32.totalorder %s328_s18, %s328_s18 }
  0x18   : > { %p4518_p4 = scmp.lt.s32.totalorder %s4509_s19, %s4509_s19 }
  0x19   : > { %p4512_p1 = pnand %p4511_p0, %p4510_p13 }
  0x1a   : > { %p4519_p7 = por %p4518_p4, %p4517_p3 }
  0x1b   : > { %p4513_p2 = pneg %p4512_p1 }
  0x1d   : > { %p4520_p8 = pnand %p4519_p7, %p4513_p2 }
  0x1f   : > { %4523 = shalt.err (!%p4520_p8)
}
  0x20   : > { %s4592_s20 = smov [#allocation2]   ;;  %379 = sbr.rel (%p4713_p10) target bundleno = 1959 (0x7a7), region = 68 }
  0x21   : > { %4141 = dma.vmem_to_smem (!%p4139_p12), %s328_s18, 16, %s4592_s20, [#allocation4]  }
  0x27   : > { %4569 = dma.done.wait (%p4146_p9), [#allocation4], 16  }
  0x28   : > { %4571 = vsyncadd (%p4146_p9), [#allocation4], 4294967280 }
  0x29   : > { %385 = sfence }
  0x2a   : > { %v4367_v0 = vld [vmem:[%s6113_s2 + $0x84] ss:$8 sps:$4 sm:$0xff]   ;;  %s422_s29 = smul.u32 18, %s4685_s25  ;;  %v4369_v1 = vld [vmem:[%s6113_s2 + $0x80] ss:$8 sps:$4 sm:$0xff]   ;;  %v6125_v2 = vmov 0  }
  0x2b   : > { %719 = vmatprep.mubr.bf16.mxu0 %v6125_v2  ;;  %687 = vmatprep.subr.bf16.mxu0 %v4367_v0  ;;  %v4370_v3 = vld [vmem:[%s6113_s2 + $0x94] ss:$8 sps:$4 sm:$0xff]   ;;  %v4372_v4 = vld [vmem:[%s6113_s2 + $0x90] ss:$8 sps:$4 sm:$0xff]   ;;  %v4373_v5 = vld [vmem:[%s6113_s2 + $0xa4] ss:$8 sps:$4 sm:$0xff]  }
  0x2c   : > { %p423_p9 = scmp.lt.s32.totalorder %s422_s29, 35  ;;  %688 = vmatpush1.bf16.msra.mxu0 %v4369_v1  ;;  %v4375_v6 = vld [vmem:[%s6113_s2 + $0xa0] ss:$8 sps:$4 sm:$0xff]   ;;  %v4376_v7 = vld [vmem:[%s6113_s2 + $0xb4] ss:$8 sps:$4 sm:$0xff]   ;;  %vm1039_vm1 = vcmask 1046528  }
  0x2d   : > { %689 = vmatprep.subr.bf16.mxu0 %v4370_v3  ;;  %v4378_v8 = vld [vmem:[%s6113_s2 + $0xb0] ss:$8 sps:$4 sm:$0xff]   ;;  %v4379_v9 = vld [vmem:[%s6113_s2 + $0xc4] ss:$8 sps:$4 sm:$0xff]   ;;  %v4381_v10 = vld [vmem:[%s6113_s2 + $0xc0] ss:$8 sps:$4 sm:$0xff]  }
  0x2e   : > { %s6147_s29 = smov (!%p423_p9, %s422_s29), 35  ;;  %v4382_v12 = vld [vmem:[%s6113_s2 + $0xd4] ss:$8 sps:$4 sm:$0xff]   ;;  %v4384_v13 = vld [vmem:[%s6113_s2 + $0xd0] ss:$8 sps:$4 sm:$0xff]   ;;  %s1305_s0 = sld [smem:[#allocation2]] }
  0x2f   : > { %s3670_s16 = sshll.u32 %s6147_s29, 2  ;;  %v4385_v14 = vld [vmem:[%s6113_s2 + $0xe4] ss:$8 sps:$4 sm:$0xff]   ;;  %v4387_v17 = vld [vmem:[%s6113_s2 + $0xe0] ss:$8 sps:$4 sm:$0xff]   ;;  %s4594_s17 = smov 108  }
  0x30   : > { %690 = vmatpush1.bf16.msra.mxu0 %v4372_v4  ;;  %s4756_s20 = scalar_lea.vmem %s6112_s1, %s3670_s16  ;;  %v4388_v21 = vld [vmem:[%s6113_s2 + $0xf4] ss:$8 sps:$4 sm:$0xff]   ;;  %v4390_v22 = vld [vmem:[%s6113_s2 + $0xf0] ss:$8 sps:$4 sm:$0xff]   ;;  %vm526_vm0 = vsmask.f32 7424 }
  0x31   : > { %691 = vmatprep.subr.bf16.mxu0 %v4373_v5  ;;  %v4768_v11 = vld [vmem:[%s4756_s20] sm:$0xff]   ;;  %v4780_v15 = vld [vmem:[%s4756_s20 + $0x8] sm:$0xff]   ;;  %v4795_v25 = vld [vmem:[%s4756_s20 + $0x10] sm:$0xff]   ;;  %s4595_s30 = smov 118   ;;  %vm2241_vm2 = vcmask 97280   ;;  %vm1607_vm3 = vcmask 965632  }
  0x32   : > { %v530_v16 = vshll.u32 %v4768_v11, 16  ;;  %v528_v18 = vshrl.u32 %v4768_v11, 16  ;;  %v535_v20 = vshll.u32 %v4780_v15, 16  ;;  %v4395_v26 = vld [vmem:[%s6113_s2 + $0x4] ss:$8 sps:$4 sm:$0xff]   ;;  %v539_v29 = vshrl.u32 %v4780_v15, 16 }
  0x33   : > { %v4393_v28 = vld [vmem:[%s6113_s2] ss:$8 sps:$4 sm:$0xff]   ;;  %v543_v30 = vshll.u32 %v4795_v25, 16  ;;  %v4399_v31 = vld [vmem:[%s6113_s2 + $0x14] ss:$8 sps:$4 sm:$0xff]   ;;  %v547_v42 = vshrl.u32 %v4795_v25, 16 }
  0x34   : > { %692 = vmatpush1.bf16.msra.mxu0 %v4375_v6  ;;  %v532_v19 = vrot.slane %v530_v16, 1  ;;  %v537_v24 = vrot.slane %v535_v20, 1  ;;  %v4810_v32 = vld [vmem:[%s4756_s20 + $0x18] sm:$0xff]   ;;  %v4817_v36 = vld [vmem:[%s4756_s20 + $0x20] sm:$0xff]   ;;  %v4820_v37 = vld [vmem:[%s4756_s20 + $0x28] sm:$0xff]   ;;  %vm1770_vm4 = vcmask 883712  }
  0x35   : > { %693 = vmatprep.subr.bf16.mxu0 %v4376_v7  ;;  %v4397_v33 = vld [vmem:[%s6113_s2 + $0x10] ss:$8 sps:$4 sm:$0xff]   ;;  %v545_v35 = vrot.slane %v543_v30, 1  ;;  %v4403_v38 = vld [vmem:[%s6113_s2 + $0x24] ss:$8 sps:$4 sm:$0xff]   ;;  %v551_v39 = vshll.u32 %v4810_v32, 16 }
  0x36   : > { %v533_v23 = vor.u32 %v532_v19, %v528_v18  ;;  %v541_v34 = vor.u32 %v539_v29, %v537_v24  ;;  %v4401_v40 = vld [vmem:[%s6113_s2 + $0x20] ss:$8 sps:$4 sm:$0xff]   ;;  %v559_v43 = vshll.u32 %v4817_v36, 16  ;;  %v4407_v44 = vld [vmem:[%s6113_s2 + $0x34] ss:$8 sps:$4 sm:$0xff]   ;;  %v567_v45 = vshll.u32 %v4820_v37, 16 }
  0x37   : > { %v4837_v46 = vld [vmem:[%s4756_s20 + $0x30] sm:$0xff]   ;;  %v553_v47 = vrot.slane %v551_v39, 1  ;;  %v555_v48 = vshrl.u32 %v4810_v32, 16  ;;  %v563_v50 = vshrl.u32 %v4817_v36, 16  ;;  %v4411_v51 = vld [vmem:[%s6113_s2 + $0x44] ss:$8 sps:$4 sm:$0xff]   ;;  %v549_v52 = vor.u32 %v547_v42, %v545_v35 }
  0x38   : > { %694 = vmatpush1.bf16.msra.mxu0 %v4378_v8  ;;  %v538_v27 = vsel %vm526_vm0, %v533_v23, %v537_v24  ;;  %v546_v41 = vsel %vm526_vm0, %v541_v34, %v545_v35  ;;  %v4405_v49 = vld [vmem:[%s6113_s2 + $0x30] ss:$8 sps:$4 sm:$0xff]   ;;  %v561_v53 = vrot.slane %v559_v43, 1  ;;  %v569_v54 = vrot.slane %v567_v45, 1  ;;  %v4409_v58 = vld [vmem:[%s6113_s2 + $0x40] ss:$8 sps:$4 sm:$0xff]  }
  0x39   : > { %695 = vmatprep.subr.bf16.mxu0 %v4379_v9  ;;  %v571_v55 = vshrl.u32 %v4820_v37, 16  ;;  %v575_v56 = vshll.u32 %v4837_v46, 16  ;;  %v579_v57 = vshrl.u32 %v4837_v46, 16  ;;  %v4415_v59 = vld [vmem:[%s6113_s2 + $0x54] ss:$8 sps:$4 sm:$0xff]   ;;  %v554_v60 = vsel %vm526_vm0, %v549_v52, %v553_v47  ;;  %s3848_s29 = sld [smem:[#allocation2 + $0x1]] }
  0x3a   : > { %v4413_v61 = vld [vmem:[%s6113_s2 + $0x50] ss:$8 sps:$4 sm:$0xff]   ;;  %v557_v62 = vor.u32 %v555_v48, %v553_v47  ;;  %v4419_v63 = vld [vmem:[%s6113_s2 + $0x64] ss:$8 sps:$4 sm:$0xff]   ;;  %v4417_v0 = vld [vmem:[%s6113_s2 + $0x60] ss:$8 sps:$4 sm:$0xff]   ;;  %v565_v5 = vor.u32 %v563_v50, %v561_v53 }
  0x3b   : > { %v4423_v1 = vld [vmem:[%s6113_s2 + $0x74] ss:$8 sps:$4 sm:$0xff]   ;;  %v4421_v4 = vld [vmem:[%s6113_s2 + $0x70] ss:$8 sps:$4 sm:$0xff]   ;;  %v4426_v6 = vld [vmem:[%s6113_s2 + $0x104] ss:$8 sps:$4 sm:$0xff]   ;;  %v573_v9 = vor.u32 %v571_v55, %v569_v54 }
  0x3c   : > { %696 = vmatpush1.bf16.msra.mxu0 %v4381_v10  ;;  %v562_v3 = vsel %vm526_vm0, %v557_v62, %v561_v53  ;;  %v4880_v7 = vld [vmem:[%s4756_s20 + $0x38] sm:$0xff]   ;;  %v570_v8 = vsel %vm526_vm0, %v565_v5, %v569_v54  ;;  %v577_v10 = vrot.slane %v575_v56, 1  ;;  %v4432_v30 = vld [vmem:[%s6113_s2 + $0x124] ss:$8 sps:$4 sm:$0xff]   ;;  %v4442_v42 = vld [vmem:[%s6113_s2 + $0x160] ss:$8 sps:$4 sm:$0xff]  }
  0x3d   : > { %697 = vmatprep.subr.bf16.mxu0 %v4382_v12  ;;  %v583_v12 = vshll.u32 %v4880_v7, 16  ;;  %v587_v19 = vshrl.u32 %v4880_v7, 16  ;;  %v4427_v29 = vld [vmem:[%s6113_s2 + $0x110] ss:$8 sps:$4 sm:$0xff]   ;;  %v4438_v35 = vld [vmem:[%s6113_s2 + $0x144] ss:$8 sps:$4 sm:$0xff]  }
  0x3e   : > { %v4433_v34 = vld [vmem:[%s6113_s2 + $0x130] ss:$8 sps:$4 sm:$0xff]   ;;  %v4441_v39 = vld [vmem:[%s6113_s2 + $0x154] ss:$8 sps:$4 sm:$0xff]   ;;  %v1040_v45 = vrot.slane %v4768_v11, 1  ;;  %v1041_v47 = vrot.slane %v4780_v15, 1 }
  0x3f   : > { %v585_v16 = vrot.slane %v583_v12, 1  ;;  %v4447_v43 = vld [vmem:[%s6113_s2 + $0x174] ss:$8 sps:$4 sm:$0xff]   ;;  %vm2040_vm5 = vcmask 1045504   ;;  %vm3016_vm6 = vcmask 654336   ;;  %vm3389_vm7 = vcmask 424960  }
  0x40   : > { %698 = vmatpush1.bf16.msra.mxu0 %v4384_v13  ;;  %v578_v13 = vsel %vm526_vm0, %v573_v9, %v577_v10  ;;  %v1042_v48 = vsel %vm1039_vm1, %v1040_v45, %v1041_v47  ;;  %vm3396_vm8 = vcmask 1041408   ;;  %vm3505_vm9 = vcmask 785408   ;;  %s419_s16 = sand.u32 1, %s4582_s22   ;;  %s3921_s26 = smul.u32 192, %s4685_s25 }
  0x41   : > { %699 = vmatprep.subr.bf16.mxu0 %v4385_v14  ;;  %v581_v14 = vor.u32 %v579_v57, %v577_v10 }
  0x42   : > { %s6068_s28 = scalar_lea.hbm %s6123_s12, %s3921_s26 }
  0x43   : > { %v586_v18 = vsel %vm526_vm0, %v581_v14, %v585_v16 }
  0x44   : > { %700 = vmatpush1.bf16.msra.mxu0 %v4387_v17  ;;  %v4888_v17 = vld [vmem:[%s4756_s20 + $0x40] sm:$0xff]   ;;  %s4131_s20 = smul.u32 12, %s419_s16 }
  0x45   : > { %701 = vmatprep.subr.bf16.mxu0 %v4388_v21  ;;  %v591_v20 = vshll.u32 %v4888_v17, 16  ;;  %v589_v21 = vor.u32 %v587_v19, %v585_v16  ;;  %v595_v24 = vshrl.u32 %v4888_v17, 16 }
  0x46   : > { %s421_s18 = scalar_lea.vmem [#allocation5], %s4131_s20 }
  0x47   : > { %s3590_s19 = sshll.u32 %s421_s18, 4  ;;  %s6063_s19 = int_to_ptr.vmem [resolvable:$true] %s3590_s19 }
  0x48   : > { %702 = vmatpush1.bf16.msra.mxu0 %v4390_v22  ;;  %v593_v22 = vrot.slane %v591_v20, 1  ;;  %s4524_s25 = scalar_lea.vmem %s6063_s19, 192 }
  0x49   : > { %899 = vmatprep.subr.bf16.mxu0 %v4395_v26  ;;  %p4525_p10 = scmp.ne.s32.totalorder %s6063_s19, %s4524_s25 }
  0x4a   : > { %v594_v23 = vsel %vm526_vm0, %v589_v21, %v593_v22  ;;  %v597_v26 = vor.u32 %v595_v24, %v593_v22 }
  0x4b   : > { %720 = vmatmul.mubr.bf16.vlgmr.msra.gmra.mrb[0].mxu0 %v538_v27  ;;  %v4424_v27 = vld [vmem:[%s6113_s2 + $0x100] ss:$8 sps:$4 sm:$0xff]   ;;  %p4526_p11 = pnand %p4525_p10, %p4702_p5 }
  0x4c   : > { %900 = vmatpush1.bf16.msra.mxu0 %v4393_v28  ;;  %729 = vmatprep.mubr.bf16.mxu0 %v6125_v2  ;;  %v4429_v28 = vld [vmem:[%s6113_s2 + $0x114] ss:$8 sps:$4 sm:$0xff]  }
  0x4d   : > { %901 = vmatprep.subr.bf16.mxu0 %v4399_v31  ;;  %v4430_v31 = vld [vmem:[%s6113_s2 + $0x120] ss:$8 sps:$4 sm:$0xff]   ;;  %p4527_p12 = pneg %p4526_p11 }
  0x50   : > { %902 = vmatpush1.bf16.msra.mxu0 %v4397_v33  ;;  %v4435_v33 = vld [vmem:[%s6113_s2 + $0x134] ss:$8 sps:$4 sm:$0xff]  }
  0x51   : > { %903 = vmatprep.subr.bf16.mxu0 %v4403_v38  ;;  %v4436_v38 = vld [vmem:[%s6113_s2 + $0x140] ss:$8 sps:$4 sm:$0xff]  }
  0x53   : > { %730 = vmatmul.mubr.bf16.gmra.mrb[4].mxu0 %v546_v41  ;;  %v4444_v41 = vld [vmem:[%s6113_s2 + $0x164] ss:$8 sps:$4 sm:$0xff]  }
  0x54   : > { %739 = vmatprep.mubr.bf16.mxu0 %v6125_v2  ;;  %904 = vmatpush1.bf16.msra.mxu0 %v4401_v40  ;;  %v4439_v40 = vld [vmem:[%s6113_s2 + $0x150] ss:$8 sps:$4 sm:$0xff]  }
  0x55   : > { %905 = vmatprep.subr.bf16.mxu0 %v4407_v44  ;;  %v4445_v44 = vld [vmem:[%s6113_s2 + $0x170] ss:$8 sps:$4 sm:$0xff]  }
  0x58   : > { %906 = vmatpush1.bf16.msra.mxu0 %v4405_v49  ;;  %v1043_v49 = vrot.slane %v4795_v25, 1 }
  0x59   : > { %907 = vmatprep.subr.bf16.mxu0 %v4411_v51  ;;  %v1045_v51 = vrot.slane %v4810_v32, 1 }
  0x5a   : > { %v1044_v50 = vsel %vm1039_vm1, %v1041_v47, %v1043_v49 }
  0x5b   : > { %740 = vmatmul.mubr.bf16.gmra.mrb[8].mxu0 %v554_v60  ;;  %v1046_v52 = vsel %vm1039_vm1, %v1043_v49, %v1045_v51 }
  0x5c   : > { %749 = vmatprep.mubr.bf16.mxu0 %v6125_v2  ;;  %908 = vmatpush1.bf16.msra.mxu0 %v4409_v58 }
  0x5d   : > { %909 = vmatprep.subr.bf16.mxu0 %v4415_v59  ;;  %v1306_v59 = vld [vmem:[%s6114_s3] sm:$0x3] }
  0x60   : > { %910 = vmatpush1.bf16.msra.mxu0 %v4413_v61 }
  0x61   : > { %911 = vmatprep.subr.bf16.mxu0 %v4419_v63 }
  0x63   : > { %750 = vmatmul.mubr.bf16.gmra.mrb[12].mxu0 %v562_v3  ;;  %v4994_v3 = vstv %s1305_s0  ;;  %s3897_s0 = sld [smem:[#allocation2 + $0x2]] }
  0x64   : > { %759 = vmatprep.mubr.bf16.mxu0 %v6125_v2  ;;  %912 = vmatpush1.bf16.msra.mxu0 %v4417_v0 }
  0x65   : > { %913 = vmatprep.subr.bf16.mxu0 %v4423_v1 }
  0x68   : > { %914 = vmatpush1.bf16.msra.mxu0 %v4421_v4 }
  0x69   : > { %1146 = vmatprep.subr.bf16.mxu0 %v4426_v6 }
  0x6b   : > { %760 = vmatmul.mubr.bf16.gmra.mrb[16].mxu0 %v570_v8 }
  0x6c   : > { %769 = vmatprep.mubr.bf16.mxu0 %v6125_v2 }
  0x73   : > { %770 = vmatmul.mubr.bf16.gmra.mrb[20].mxu0 %v578_v13 }
  0x74   : > { %779 = vmatprep.mubr.bf16.mxu0 %v6125_v2 }
  0x7b   : > { %780 = vmatmul.mubr.bf16.gmra.mrb[24].mxu0 %v586_v18 }
  0x7c   : > { %789 = vmatprep.mubr.bf16.mxu0 %v6125_v2 }
  0x83   : > { %790 = vmatmul.mubr.bf16.gmra.mrb[28].mxu0 %v594_v23 }
  0x84   : > { %799 = vmatprep.mubr.bf16.mxu0 %v6125_v2 }
  0x8b   : > { %800 = vmatmul.mubr.bf16.gmra.mrb[32].mxu0 %v597_v26 }
  0x8c   : > { %931 = vmatprep.mubr.bf16.mxu0 %v6125_v2 }
  0x93   : > { %932 = vmatmul.mubr.bf16.vlgmr.msra.gmra.mrb[0].mxu0 %v4768_v11  ;;  %v1047_v11 = vrot.slane %v4817_v36, 1 }
  0x94   : > { %1147 = vmatpush1.bf16.msra.mxu0 %v4424_v27  ;;  %941 = vmatprep.mubr.bf16.mxu0 %v6125_v2 }
  0x95   : > { %1148 = vmatprep.subr.bf16.mxu0 %v4429_v28 }
  0x98   : > { %1149 = vmatpush1.bf16.msra.mxu0 %v4427_v29 }
  0x99   : > { %1150 = vmatprep.subr.bf16.mxu0 %v4432_v30 }
  0x9b   : > { %942 = vmatmul.mubr.bf16.gmra.mrb[4].mxu0 %v4780_v15  ;;  %v1048_v15 = vsel %vm1039_vm1, %v1045_v51, %v1047_v11 }
  0x9c   : > { %951 = vmatprep.mubr.bf16.mxu0 %v6125_v2  ;;  %1151 = vmatpush1.bf16.msra.mxu0 %v4430_v31 }
  0x9d   : > { %1152 = vmatprep.subr.bf16.mxu0 %v4435_v33 }
  0xa0   : > { %1153 = vmatpush1.bf16.msra.mxu0 %v4433_v34 }
  0xa1   : > { %1154 = vmatprep.subr.bf16.mxu0 %v4438_v35 }
  0xa3   : > { %952 = vmatmul.mubr.bf16.gmra.mrb[8].mxu0 %v4795_v25  ;;  %v1049_v25 = vrot.slane %v4820_v37, 1 }
  0xa4   : > { %961 = vmatprep.mubr.bf16.mxu0 %v6125_v2  ;;  %1155 = vmatpush1.bf16.msra.mxu0 %v4436_v38 }
  0xa5   : > { %1156 = vmatprep.subr.bf16.mxu0 %v4441_v39  ;;  %v1050_v53 = vsel %vm1039_vm1, %v1047_v11, %v1049_v25 }
  0xa8   : > { %1157 = vmatpush1.bf16.msra.mxu0 %v4439_v40 }
  0xa9   : > { %1158 = vmatprep.subr.bf16.mxu0 %v4444_v41 }
  0xab   : > { %962 = vmatmul.mubr.bf16.gmra.mrb[12].mxu0 %v4810_v32  ;;  %v1051_v32 = vrot.slane %v4837_v46, 1 }
  0xac   : > { %971 = vmatprep.mubr.bf16.mxu0 %v6125_v2  ;;  %1159 = vmatpush1.bf16.msra.mxu0 %v4442_v42 }
  0xad   : > { %1160 = vmatprep.subr.bf16.mxu0 %v4447_v43  ;;  %v1052_v54 = vsel %vm1039_vm1, %v1049_v25, %v1051_v32 }
  0xb0   : > { %1161 = vmatpush1.bf16.msra.mxu0 %v4445_v44 }
  0xb3   : > { %972 = vmatmul.mubr.bf16.gmra.mrb[16].mxu0 %v4817_v36  ;;  %v1053_v36 = vrot.slane %v4880_v7, 1 }
  0xb4   : > { %981 = vmatprep.mubr.bf16.mxu0 %v6125_v2 }
  0xb5   : > { %v1054_v55 = vsel %vm1039_vm1, %v1051_v32, %v1053_v36 }
  0xbb   : > { %982 = vmatmul.mubr.bf16.gmra.mrb[20].mxu0 %v4820_v37  ;;  %v1055_v37 = vrot.slane %v4888_v17, 1 }
  0xbc   : > { %991 = vmatprep.mubr.bf16.mxu0 %v6125_v2 }
  0xbd   : > { %v1056_v56 = vsel %vm1039_vm1, %v1053_v36, %v1055_v37 }
  0xc3   : > { %992 = vmatmul.mubr.bf16.gmra.mrb[24].mxu0 %v4837_v46  ;;  %v1308_v46 = vlaneseq }
  0xc4   : > { %1001 = vmatprep.mubr.bf16.mxu0 %v6125_v2 }
  0xc5   : > { %v1309_v57 = vshrl.u32 %v1308_v46, 7 }
  0xc7   : > { %v1310_v58 = vsub.s32 0, %v1309_v57  ;;  %v1314_v60 = vsub.s32 1, %v1309_v57 }
  0xc9   : > { %v4989_v61 = vrot.slane %v1306_v59, %v1310_v58  ;;  %v4991_v62 = vrot.slane %v1306_v59, %v1314_v60 }
  0xcb   : > { %1002 = vmatmul.mubr.bf16.gmra.mrb[28].mxu0 %v4880_v7 }
  0xcc   : > { %1011 = vmatprep.mubr.bf16.mxu0 %v6125_v2 }
  0xd3   : > { %1012 = vmatmul.mubr.bf16.gmra.mrb[32].mxu0 %v4888_v17 }
  0xd4   : > { %1178 = vmatprep.mubr.bf16.mxu0 %v6125_v2 }
  0xdb   : > { %1179 = vmatmul.mubr.bf16.vlgmr.msra.gmra.mrb[0].mxu0 %v1042_v48 }
  0xdc   : > { %1188 = vmatprep.mubr.bf16.mxu0 %v6125_v2 }
  0xe3   : > { %1189 = vmatmul.mubr.bf16.gmra.mrb[4].mxu0 %v1044_v50 }
  0xe4   : > { %1198 = vmatprep.mubr.bf16.mxu0 %v6125_v2 }
  0xeb   : > { %1199 = vmatmul.mubr.bf16.gmra.mrb[8].mxu0 %v1046_v52 }
  0xec   : > { %1208 = vmatprep.mubr.bf16.mxu0 %v6125_v2 }
  0xf3   : > { %1209 = vmatmul.mubr.bf16.gmra.mrb[12].mxu0 %v1048_v15 }
  0xf4   : > { %1218 = vmatprep.mubr.bf16.mxu0 %v6125_v2 }
  0xfb   : > { %1219 = vmatmul.mubr.bf16.gmra.mrb[16].mxu0 %v1050_v53 }
  0xfc   : > { %1228 = vmatprep.mubr.bf16.mxu0 %v6125_v2 }
 0x103   : > { %1229 = vmatmul.mubr.bf16.gmra.mrb[20].mxu0 %v1052_v54 }
 0x104   : > { %1238 = vmatprep.mubr.bf16.mxu0 %v6125_v2 }
 0x10b   : > { %1239 = vmatmul.mubr.bf16.gmra.mrb[24].mxu0 %v1054_v55 }
 0x10c   : > { %1248 = vmatprep.mubr.bf16.mxu0 %v6125_v2 }
 0x113   : > { %1249 = vmatmul.mubr.bf16.gmra.mrb[28].mxu0 %v1056_v56 }
 0x114   : > { %1258 = vmatprep.mubr.bf16.mxu0 %v6125_v2 }
 0x11b   : > { %1259 = vmatmul.mubr.bf16.gmra.mrb[32].mxu0 %v1055_v37 }
 0x1ae   : > { %v1180_v63 = vpop.f32.mrb[0].mxu0 }
 0x1af   : > { %v1318_v0 = vadd.f32 %v4989_v61, %v1180_v63  ;;  %v1182_v1 = vpop.f32.mrb[1].mxu0 }
 0x1b0   : > { %v1319_v4 = vadd.f32 %v4991_v62, %v1182_v1  ;;  %v1184_v5 = vpop.f32.mrb[2].mxu0 }
 0x1b1   : > { %v1390_v6 = vmin.f32 %v1318_v0, 0.0  ;;  %v1320_v7 = vadd.f32 %v4989_v61, %v1184_v5  ;;  %v1186_v8 = vpop.f32.mrb[3].mxu0  ;;  %v1354_v12 = vmax.f32 %v1318_v0, 0.0 }
 0x1b2   : > { %v1391_v9 = vmin.f32 %v1319_v4, 0.0  ;;  %v1321_v10 = vadd.f32 %v4991_v62, %v1186_v8  ;;  %v1355_v16 = vmax.f32 %v1319_v4, 0.0 }
 0x1b3   : > { %v1427_v13 = vmul.f32 %v4994_v3, %v1390_v6  ;;  %v1392_v14 = vmin.f32 %v1320_v7, 0.0  ;;  %v1356_v20 = vmax.f32 %v1320_v7, 0.0 }
 0x1b4   : > { %v1428_v17 = vmul.f32 %v4994_v3, %v1391_v9  ;;  %v1393_v18 = vmin.f32 %v1321_v10, 0.0  ;;  %v1357_v23 = vmax.f32 %v1321_v10, 0.0 }
 0x1b5   : > { %v5001_v19 = vadd.f32 %v1427_v13, %v1354_v12  ;;  %v1429_v21 = vmul.f32 %v4994_v3, %v1392_v14 }
 0x1b6   : > { %v5004_v22 = vadd.f32 %v1428_v17, %v1355_v16  ;;  %v1430_v24 = vmul.f32 %v4994_v3, %v1393_v18  ;;  %v1190_v26 = vpop.f32.mrb[4].mxu0 }
 0x1b7   : > { %v5007_v27 = vadd.f32 %v1429_v21, %v1356_v20  ;;  %v1322_v28 = vadd.f32 %v4989_v61, %v1190_v26  ;;  %v1192_v29 = vpop.f32.mrb[5].mxu0 }
 0x1b8   : > { %v5010_v30 = vadd.f32 %v1430_v24, %v1357_v23  ;;  %v1323_v31 = vadd.f32 %v4991_v62, %v1192_v29  ;;  %v1194_v33 = vpop.f32.mrb[6].mxu0  ;;  %v4192_v34 = vpack.i.bf16 %v5004_v22, %v5001_v19 }
 0x1b9   : > { %v1394_v35 = vmin.f32 %v1322_v28, 0.0  ;;  %v1324_v38 = vadd.f32 %v4989_v61, %v1194_v33  ;;  %v1196_v39 = vpop.f32.mrb[7].mxu0  ;;  %v1358_v42 = vmax.f32 %v1322_v28, 0.0 }
 0x1ba   : > { %v1395_v40 = vmin.f32 %v1323_v31, 0.0  ;;  %v1325_v41 = vadd.f32 %v4991_v62, %v1196_v39  ;;  %4193 = vrot.lane.b32.xlu1 %v4192_v34, %s4594_s17  ;;  %4188 = vrot.lane.b32.xlu0 %v4192_v34, %s4595_s30  ;;  %v1359_v45 = vmax.f32 %v1323_v31, 0.0  ;;  %v4197_v49 = vpack.i.bf16 %v5010_v30, %v5007_v27 }
 0x1bb   : > { %v1431_v43 = vmul.f32 %v4994_v3, %v1394_v35  ;;  %v1396_v44 = vmin.f32 %v1324_v38, 0.0  ;;  %v1360_v11 = vmax.f32 %v1324_v38, 0.0 }
 0x1bc   : > { %v1432_v47 = vmul.f32 %v4994_v3, %v1395_v40  ;;  %v1397_v48 = vmin.f32 %v1325_v41, 0.0  ;;  %v1361_v15 = vmax.f32 %v1325_v41, 0.0 }
 0x1bd   : > { %v5023_v50 = vadd.f32 %v1431_v43, %v1358_v42  ;;  %v1433_v51 = vmul.f32 %v4994_v3, %v1396_v44 }
 0x1be   : > { %v5026_v52 = vadd.f32 %v1432_v47, %v1359_v45  ;;  %v1434_v25 = vmul.f32 %v4994_v3, %v1397_v48  ;;  %4198 = vrot.lane.b32.xlu0 %v4197_v49, %s4595_s30  ;;  %v1200_v53 = vpop.f32.mrb[8].mxu0 }
 0x1bf   : > { %v1326_v32 = vadd.f32 %v4989_v61, %v1200_v53  ;;  %v1202_v54 = vpop.f32.mrb[9].mxu0  ;;  %v5031_v36 = vadd.f32 %v1433_v51, %v1360_v11 }
 0x1c0   : > { %v5033_v55 = vadd.f32 %v1434_v25, %v1361_v15  ;;  %v1327_v37 = vadd.f32 %v4991_v62, %v1202_v54  ;;  %v1204_v56 = vpop.f32.mrb[10].mxu0  ;;  %v4207_v46 = vpack.i.bf16 %v5026_v52, %v5023_v50 }
 0x1c1   : > { %v1398_v57 = vmin.f32 %v1326_v32, 0.0  ;;  %v1328_v58 = vadd.f32 %v4989_v61, %v1204_v56  ;;  %v1206_v59 = vpop.f32.mrb[11].mxu0  ;;  %v1362_v0 = vmax.f32 %v1326_v32, 0.0 }
 0x1c2   : > { %v1399_v60 = vmin.f32 %v1327_v37, 0.0  ;;  %v1329_v63 = vadd.f32 %v4991_v62, %v1206_v59  ;;  %4203 = vrot.lane.b32.xlu0 %v4197_v49, %s4594_s17  ;;  %4208 = vrot.lane.b32.xlu1 %v4207_v46, %s4595_s30  ;;  %v1363_v5 = vmax.f32 %v1327_v37, 0.0  ;;  %v4217_v8 = vpack.i.bf16 %v5033_v55, %v5031_v36 }
 0x1c3   : > { %v1435_v1 = vmul.f32 %v4994_v3, %v1398_v57  ;;  %v1400_v4 = vmin.f32 %v1328_v58, 0.0  ;;  %v1364_v13 = vmax.f32 %v1328_v58, 0.0 }
 0x1c4   : > { %v1436_v6 = vmul.f32 %v4994_v3, %v1399_v60  ;;  %v1401_v7 = vmin.f32 %v1329_v63, 0.0  ;;  %v1365_v14 = vmax.f32 %v1329_v63, 0.0 }
 0x1c5   : > { %v5046_v9 = vadd.f32 %v1435_v1, %v1362_v0  ;;  %v1437_v10 = vmul.f32 %v4994_v3, %v1400_v4 }
 0x1c6   : > { %v5049_v12 = vadd.f32 %v1436_v6, %v1363_v5  ;;  %v1438_v16 = vmul.f32 %v4994_v3, %v1401_v7  ;;  %4213 = vrot.lane.b32.xlu1 %v4207_v46, %s4594_s17  ;;  %4218 = vrot.lane.b32.xlu0 %v4217_v8, %s4595_s30  ;;  %v1210_v17 = vpop.f32.mrb[12].mxu0 }
 0x1c7   : > { %v1330_v18 = vadd.f32 %v4989_v61, %v1210_v17  ;;  %v1212_v20 = vpop.f32.mrb[13].mxu0  ;;  %v5055_v21 = vadd.f32 %v1437_v10, %v1364_v13 }
 0x1c8   : > { %v5057_v23 = vadd.f32 %v1438_v16, %v1365_v14  ;;  %v1331_v24 = vadd.f32 %v4991_v62, %v1212_v20  ;;  %v1214_v26 = vpop.f32.mrb[14].mxu0  ;;  %v4227_v28 = vpack.i.bf16 %v5049_v12, %v5046_v9 }
 0x1c9   : > { %v1402_v29 = vmin.f32 %v1330_v18, 0.0  ;;  %v1332_v31 = vadd.f32 %v4989_v61, %v1214_v26  ;;  %v1216_v33 = vpop.f32.mrb[15].mxu0  ;;  %v1366_v38 = vmax.f32 %v1330_v18, 0.0 }
 0x1ca   : > { %v1403_v34 = vmin.f32 %v1331_v24, 0.0  ;;  %v1333_v35 = vadd.f32 %v4991_v62, %v1216_v33  ;;  %4223 = vrot.lane.b32.xlu0 %v4217_v8, %s4594_s17  ;;  %4228 = vrot.lane.b32.xlu1 %v4227_v28, %s4595_s30  ;;  %v1367_v41 = vmax.f32 %v1331_v24, 0.0  ;;  %v4237_v44 = vpack.i.bf16 %v5057_v23, %v5055_v21 }
 0x1cb   : > { %v1439_v39 = vmul.f32 %v4994_v3, %v1402_v29  ;;  %v1404_v40 = vmin.f32 %v1332_v31, 0.0  ;;  %v1368_v49 = vmax.f32 %v1332_v31, 0.0 }
 0x1cc   : > { %v1440_v42 = vmul.f32 %v4994_v3, %v1403_v34  ;;  %v1405_v43 = vmin.f32 %v1333_v35, 0.0  ;;  %v1369_v51 = vmax.f32 %v1333_v35, 0.0 }
 0x1cd   : > { %v5070_v45 = vadd.f32 %v1439_v39, %v1366_v38  ;;  %v1441_v47 = vmul.f32 %v4994_v3, %v1404_v40 }
 0x1ce   : > { %v5073_v48 = vadd.f32 %v1440_v42, %v1367_v41  ;;  %v1442_v11 = vmul.f32 %v4994_v3, %v1405_v43  ;;  %4233 = vrot.lane.b32.xlu1 %v4227_v28, %s4594_s17  ;;  %4238 = vrot.lane.b32.xlu0 %v4237_v44, %s4595_s30  ;;  %v1220_v15 = vpop.f32.mrb[16].mxu0 }
 0x1cf   : > { %v1334_v25 = vadd.f32 %v4989_v61, %v1220_v15  ;;  %v1222_v53 = vpop.f32.mrb[17].mxu0  ;;  %v5079_v32 = vadd.f32 %v1441_v47, %v1368_v49 }
 0x1d0   : > { %v5081_v54 = vadd.f32 %v1442_v11, %v1369_v51  ;;  %v1335_v37 = vadd.f32 %v4991_v62, %v1222_v53  ;;  %v1224_v56 = vpop.f32.mrb[18].mxu0  ;;  %v4247_v46 = vpack.i.bf16 %v5073_v48, %v5070_v45 }
 0x1d1   : > { %v1406_v57 = vmin.f32 %v1334_v25, 0.0  ;;  %v1336_v58 = vadd.f32 %v4989_v61, %v1224_v56  ;;  %v1226_v59 = vpop.f32.mrb[19].mxu0  ;;  %v1370_v0 = vmax.f32 %v1334_v25, 0.0 }
 0x1d2   : > { %v1407_v60 = vmin.f32 %v1335_v37, 0.0  ;;  %v1337_v63 = vadd.f32 %v4991_v62, %v1226_v59  ;;  %4243 = vrot.lane.b32.xlu0 %v4237_v44, %s4594_s17  ;;  %4248 = vrot.lane.b32.xlu1 %v4247_v46, %s4595_s30  ;;  %v1371_v5 = vmax.f32 %v1335_v37, 0.0  ;;  %v4257_v8 = vpack.i.bf16 %v5081_v54, %v5079_v32 }
 0x1d3   : > { %v1443_v1 = vmul.f32 %v4994_v3, %v1406_v57  ;;  %v1408_v4 = vmin.f32 %v1336_v58, 0.0  ;;  %v1372_v16 = vmax.f32 %v1336_v58, 0.0 }
 0x1d4   : > { %v1444_v6 = vmul.f32 %v4994_v3, %v1407_v60  ;;  %v1409_v7 = vmin.f32 %v1337_v63, 0.0  ;;  %v1373_v17 = vmax.f32 %v1337_v63, 0.0 }
 0x1d5   : > { %v5094_v10 = vadd.f32 %v1443_v1, %v1370_v0  ;;  %v1445_v13 = vmul.f32 %v4994_v3, %v1408_v4 }
 0x1d6   : > { %v5097_v14 = vadd.f32 %v1444_v6, %v1371_v5  ;;  %v1446_v18 = vmul.f32 %v4994_v3, %v1409_v7  ;;  %4253 = vrot.lane.b32.xlu1 %v4247_v46, %s4594_s17  ;;  %4258 = vrot.lane.b32.xlu0 %v4257_v8, %s4595_s30  ;;  %v1230_v20 = vpop.f32.mrb[20].mxu0 }
 0x1d7   : > { %v1338_v24 = vadd.f32 %v4989_v61, %v1230_v20  ;;  %v1232_v26 = vpop.f32.mrb[21].mxu0  ;;  %v5103_v28 = vadd.f32 %v1445_v13, %v1372_v16 }
 0x1d8   : > { %v5105_v29 = vadd.f32 %v1446_v18, %v1373_v17  ;;  %v1339_v31 = vadd.f32 %v4991_v62, %v1232_v26  ;;  %v1234_v33 = vpop.f32.mrb[22].mxu0  ;;  %v4267_v34 = vpack.i.bf16 %v5097_v14, %v5094_v10 }
 0x1d9   : > { %v1410_v35 = vmin.f32 %v1338_v24, 0.0  ;;  %v1340_v38 = vadd.f32 %v4989_v61, %v1234_v33  ;;  %v1236_v39 = vpop.f32.mrb[23].mxu0  ;;  %v1374_v42 = vmax.f32 %v1338_v24, 0.0 }
 0x1da   : > { %v1411_v40 = vmin.f32 %v1339_v31, 0.0  ;;  %v1341_v41 = vadd.f32 %v4991_v62, %v1236_v39  ;;  %4263 = vrot.lane.b32.xlu0 %v4257_v8, %s4594_s17  ;;  %4268 = vrot.lane.b32.xlu1 %v4267_v34, %s4595_s30  ;;  %v1375_v47 = vmax.f32 %v1339_v31, 0.0  ;;  %v4277_v11 = vpack.i.bf16 %v5105_v29, %v5103_v28 }
 0x1db   : > { %v1447_v43 = vmul.f32 %v4994_v3, %v1410_v35  ;;  %v1412_v44 = vmin.f32 %v1340_v38, 0.0  ;;  %v1376_v37 = vmax.f32 %v1340_v38, 0.0 }
 0x1dc   : > { %v1448_v49 = vmul.f32 %v4994_v3, %v1411_v40  ;;  %v1413_v51 = vmin.f32 %v1341_v41, 0.0  ;;  %v1377_v56 = vmax.f32 %v1341_v41, 0.0 }
 0x1dd   : > { %v5118_v15 = vadd.f32 %v1447_v43, %v1374_v42  ;;  %v1449_v25 = vmul.f32 %v4994_v3, %v1412_v44 }
 0x1de   : > { %v5121_v53 = vadd.f32 %v1448_v49, %v1375_v47  ;;  %v1450_v46 = vmul.f32 %v4994_v3, %v1413_v51  ;;  %4273 = vrot.lane.b32.xlu1 %v4267_v34, %s4594_s17  ;;  %4278 = vrot.lane.b32.xlu0 %v4277_v11, %s4595_s30  ;;  %v1240_v57 = vpop.f32.mrb[24].mxu0 }
 0x1df   : > { %v1342_v58 = vadd.f32 %v4989_v61, %v1240_v57  ;;  %v1242_v59 = vpop.f32.mrb[25].mxu0  ;;  %v5127_v60 = vadd.f32 %v1449_v25, %v1376_v37 }
 0x1e0   : > { %v5129_v63 = vadd.f32 %v1450_v46, %v1377_v56  ;;  %v1343_v0 = vadd.f32 %v4991_v62, %v1242_v59  ;;  %v1244_v1 = vpop.f32.mrb[26].mxu0  ;;  %v4287_v4 = vpack.i.bf16 %v5121_v53, %v5118_v15 }
 0x1e1   : > { %v1414_v5 = vmin.f32 %v1342_v58, 0.0  ;;  %v1344_v6 = vadd.f32 %v4989_v61, %v1244_v1  ;;  %v1246_v7 = vpop.f32.mrb[27].mxu0  ;;  %v1378_v16 = vmax.f32 %v1342_v58, 0.0 }
 0x1e2   : > { %v1415_v8 = vmin.f32 %v1343_v0, 0.0  ;;  %v1345_v13 = vadd.f32 %v4991_v62, %v1246_v7  ;;  %4283 = vrot.lane.b32.xlu0 %v4277_v11, %s4594_s17  ;;  %4288 = vrot.lane.b32.xlu1 %v4287_v4, %s4595_s30  ;;  %v1379_v20 = vmax.f32 %v1343_v0, 0.0  ;;  %v4297_v31 = vpack.i.bf16 %v5129_v63, %v5127_v60 }
 0x1e3   : > { %v1451_v17 = vmul.f32 %v4994_v3, %v1414_v5  ;;  %v1416_v18 = vmin.f32 %v1344_v6, 0.0  ;;  %v1380_v38 = vmax.f32 %v1344_v6, 0.0 }
 0x1e4   : > { %v1452_v24 = vmul.f32 %v4994_v3, %v1415_v8  ;;  %v1417_v26 = vmin.f32 %v1345_v13, 0.0  ;;  %v1381_v39 = vmax.f32 %v1345_v13, 0.0 }
 0x1e5   : > { %v5142_v33 = vadd.f32 %v1451_v17, %v1378_v16  ;;  %v1453_v34 = vmul.f32 %v4994_v3, %v1416_v18 }
 0x1e6   : > { %v5145_v35 = vadd.f32 %v1452_v24, %v1379_v20  ;;  %v1454_v40 = vmul.f32 %v4994_v3, %v1417_v26  ;;  %4293 = vrot.lane.b32.xlu1 %v4287_v4, %s4594_s17  ;;  %4298 = vrot.lane.b32.xlu0 %v4297_v31, %s4595_s30  ;;  %v1250_v41 = vpop.f32.mrb[28].mxu0 }
 0x1e7   : > { %v1346_v42 = vadd.f32 %v4989_v61, %v1250_v41  ;;  %v1252_v43 = vpop.f32.mrb[29].mxu0  ;;  %v5151_v44 = vadd.f32 %v1453_v34, %v1380_v38 }
 0x1e8   : > { %v5153_v47 = vadd.f32 %v1454_v40, %v1381_v39  ;;  %v1347_v49 = vadd.f32 %v4991_v62, %v1252_v43  ;;  %v1254_v51 = vpop.f32.mrb[30].mxu0  ;;  %v4307_v11 = vpack.i.bf16 %v5145_v35, %v5142_v33 }
 0x1e9   : > { %v1418_v25 = vmin.f32 %v1346_v42, 0.0  ;;  %v1348_v37 = vadd.f32 %v4989_v61, %v1254_v51  ;;  %v1256_v56 = vpop.f32.mrb[31].mxu0  ;;  %v1382_v58 = vmax.f32 %v1346_v42, 0.0 }
 0x1ea   : > { %v1419_v46 = vmin.f32 %v1347_v49, 0.0  ;;  %v1349_v57 = vadd.f32 %v4991_v62, %v1256_v56  ;;  %4303 = vrot.lane.b32.xlu0 %v4297_v31, %s4594_s17  ;;  %4308 = vrot.lane.b32.xlu1 %v4307_v11, %s4595_s30  ;;  %v1383_v1 = vmax.f32 %v1347_v49, 0.0  ;;  %v4317_v6 = vpack.i.bf16 %v5153_v47, %v5151_v44 }
 0x1eb   : > { %v1455_v59 = vmul.f32 %v4994_v3, %v1418_v25  ;;  %v1420_v0 = vmin.f32 %v1348_v37, 0.0  ;;  %v1384_v16 = vmax.f32 %v1348_v37, 0.0 }
 0x1ec   : > { %v1456_v4 = vmul.f32 %v4994_v3, %v1419_v46  ;;  %v1421_v5 = vmin.f32 %v1349_v57, 0.0  ;;  %v1385_v17 = vmax.f32 %v1349_v57, 0.0 }
 0x1ed   : > { %v5166_v7 = vadd.f32 %v1455_v59, %v1382_v58  ;;  %v1457_v8 = vmul.f32 %v4994_v3, %v1420_v0 }
 0x1ee   : > { %v5169_v13 = vadd.f32 %v1456_v4, %v1383_v1  ;;  %v1458_v18 = vmul.f32 %v4994_v3, %v1421_v5  ;;  %4313 = vrot.lane.b32.xlu1 %v4307_v11, %s4594_s17  ;;  %4318 = vrot.lane.b32.xlu0 %v4317_v6, %s4595_s30  ;;  %v1260_v20 = vpop.f32.mrb[32].mxu0 }
 0x1ef   : > { %v1350_v24 = vadd.f32 %v4989_v61, %v1260_v20  ;;  %v1262_v26 = vpop.f32.mrb[33].mxu0  ;;  %v5175_v31 = vadd.f32 %v1457_v8, %v1384_v16 }
 0x1f0   : > { %v5177_v34 = vadd.f32 %v1458_v18, %v1385_v17  ;;  %v1351_v38 = vadd.f32 %v4991_v62, %v1262_v26  ;;  %v1264_v39 = vpop.f32.mrb[34].mxu0  ;;  %v4327_v40 = vpack.i.bf16 %v5169_v13, %v5166_v7 }
 0x1f1   : > { %v1422_v41 = vmin.f32 %v1350_v24, 0.0  ;;  %v1352_v42 = vadd.f32 %v4989_v61, %v1264_v39  ;;  %v1266_v43 = vpop.f32.mrb[35].mxu0  ;;  %v1386_v11 = vmax.f32 %v1350_v24, 0.0 }
 0x1f2   : > { %v1423_v49 = vmin.f32 %v1351_v38, 0.0  ;;  %v1353_v51 = vadd.f32 %v4991_v62, %v1266_v43  ;;  %4323 = vrot.lane.b32.xlu0 %v4317_v6, %s4594_s17  ;;  %4328 = vrot.lane.b32.xlu1 %v4327_v40, %s4595_s30  ;;  %v1387_v56 = vmax.f32 %v1351_v38, 0.0  ;;  %v4337_v58 = vpack.i.bf16 %v5177_v34, %v5175_v31 }
 0x1f3   : > { %v1459_v25 = vmul.f32 %v4994_v3, %v1422_v41  ;;  %v1424_v37 = vmin.f32 %v1352_v42, 0.0  ;;  %v1388_v0 = vmax.f32 %v1352_v42, 0.0 }
 0x1f4   : > { %v1460_v46 = vmul.f32 %v4994_v3, %v1423_v49  ;;  %v1425_v57 = vmin.f32 %v1353_v51, 0.0  ;;  %v1389_v1 = vmax.f32 %v1353_v51, 0.0 }
 0x1f5   : > { %v5190_v61 = vadd.f32 %v1459_v25, %v1386_v11  ;;  %v1461_v59 = vmul.f32 %v4994_v3, %v1424_v37 }
 0x1f6   : > { %v5193_v62 = vadd.f32 %v1460_v46, %v1387_v56  ;;  %v1462_v4 = vmul.f32 %v4994_v3, %v1425_v57  ;;  %4333 = vrot.lane.b32.xlu1 %v4327_v40, %s4594_s17  ;;  %4338 = vrot.lane.b32.xlu0 %v4337_v58, %s4595_s30  ;;  %v4450_v3 = vld [vmem:[%s6115_s4 + $0x4] ss:$8 sps:$4 sm:$0xff]  }
 0x1f7   : > { %v5198_v5 = vadd.f32 %v1461_v59, %v1388_v0  ;;  %3769 = vmatprep.mubr.msk.bf16.mxu1 %vm2241_vm2, %v4450_v3 }
 0x1f8   : > { %v5200_v6 = vadd.f32 %v1462_v4, %v1389_v1  ;;  %v4347_v8 = vpack.i.bf16 %v5193_v62, %v5190_v61 }
 0x1fa   : > { %4343 = vrot.lane.b32.xlu0 %v4337_v58, %s4594_s17  ;;  %4348 = vrot.lane.b32.xlu1 %v4347_v8, %s4595_s30  ;;  %v4357_v16 = vpack.i.bf16 %v5200_v6, %v5198_v5 }
 0x1fe   : > { %4353 = vrot.lane.b32.xlu1 %v4347_v8, %s4594_s17  ;;  %4358 = vrot.lane.b32.xlu0 %v4357_v16, %s4595_s30  ;;  %s4596_s30 = smov [#allocation5]  }
 0x1ff   : > { %s4528_s20 = sshll.u32 %s4596_s30, 4  ;;  %s4529_s20 = int_to_ptr.vmem [resolvable:$false] %s4528_s20 }
 0x200   : > { %s4530_s23 = scalar_lea.vmem %s4529_s20, 384  ;;  %p4531_p13 = scmp.lt.s32.totalorder %s6063_s19, %s4529_s20 }
 0x201   : > { %p4532_p0 = scmp.lt.s32.totalorder %s4530_s23, %s4524_s25 }
 0x202   : > { %4363 = vrot.lane.b32.xlu1 %v4357_v16, %s4594_s17  ;;  %s6070_s17 = scalar_lea.sflag [#allocation3], %s419_s16 }
 0x203   : > { %p4533_p1 = por %p4532_p0, %p4531_p13 }
 0x205   : > { %p4534_p2 = pnand %p4533_p1, %p4527_p12 }
 0x22c   : > { %v4194_v17 = vpop.permute.xlu1 %4193  ;;  %v4189_v18 = vpop.permute.xlu0 %4188 }
 0x22d   : > { %v4191_v20 = vunpack.i.h.bf16 %v4189_v18  ;;  %v4190_v24 = vunpack.i.l.bf16 %v4189_v18  ;;  %v4196_v26 = vunpack.i.h.bf16 %v4194_v17  ;;  %v4195_v38 = vunpack.i.l.bf16 %v4194_v17 }
 0x22f   : > { %v1663_v39 = vmax.f32 %v5004_v22, %v4191_v20  ;;  %v1608_v40 = vsel %vm1607_vm3, %v4190_v24, %v4191_v20  ;;  %v1771_v51 = vsel %vm1770_vm4, %v4195_v38, %v4196_v26 }
 0x230   : > { %v1662_v41 = vmax.f32 %v5001_v19, %v1608_v40  ;;  %v4199_v42 = vpop.permute.xlu0 %4198 }
 0x231   : > { %v4201_v43 = vunpack.i.h.bf16 %v4199_v42  ;;  %v4200_v49 = vunpack.i.l.bf16 %v4199_v42  ;;  %v1826_v11 = vmax.f32 %v1663_v39, %v4196_v26 }
 0x232   : > { %v5219_v25 = vmax.f32 %v1662_v41, %v1771_v51 }
 0x233   : > { %v1609_v37 = vsel %vm1607_vm3, %v4200_v49, %v4201_v43  ;;  %v1665_v56 = vmax.f32 %v5010_v30, %v4201_v43  ;;  %v1901_v1 = vrot.slane %v1826_v11, 1  ;;  %v2044_v4 = vrot.slane %v1826_v11, 2 }
 0x234   : > { %v4204_v46 = vpop.permute.xlu0 %4203  ;;  %v4209_v57 = vpop.permute.xlu1 %4208  ;;  %v1664_v19 = vmax.f32 %v5007_v27, %v1609_v37  ;;  %v1898_v17 = vrot.slane %v5219_v25, 1  ;;  %v2041_v27 = vrot.slane %v5219_v25, 2 }
 0x235   : > { %v4206_v58 = vunpack.i.h.bf16 %v4204_v46  ;;  %v4205_v22 = vunpack.i.l.bf16 %v4204_v46  ;;  %v4211_v59 = vunpack.i.h.bf16 %v4209_v57  ;;  %v4210_v0 = vunpack.i.l.bf16 %v4209_v57 }
 0x237   : > { %v1772_v8 = vsel %vm1770_vm4, %v4205_v22, %v4206_v58  ;;  %v5225_v16 = vmax.f32 %v1665_v56, %v4206_v58  ;;  %v1610_v3 = vsel %vm1607_vm3, %v4210_v0, %v4211_v59  ;;  %v1667_v18 = vmax.f32 %v5026_v52, %v4211_v59 }
 0x238   : > { %v5229_v30 = vmax.f32 %v1664_v19, %v1772_v8  ;;  %v1666_v20 = vmax.f32 %v5023_v50, %v1610_v3  ;;  %v4214_v24 = vpop.permute.xlu1 %4213  ;;  %v4219_v26 = vpop.permute.xlu0 %4218 }
 0x239   : > { %v1902_v38 = vrot.slane %v5225_v16, 1  ;;  %v4216_v39 = vunpack.i.h.bf16 %v4214_v24  ;;  %v4215_v40 = vunpack.i.l.bf16 %v4214_v24  ;;  %v4221_v41 = vunpack.i.h.bf16 %v4219_v26 }
 0x23a   : > { %v4220_v42 = vunpack.i.l.bf16 %v4219_v26  ;;  %v2045_v43 = vrot.slane %v5225_v16, 2  ;;  %v1899_v49 = vrot.slane %v5229_v30, 1  ;;  %v2042_v51 = vrot.slane %v5229_v30, 2 }
 0x23b   : > { %v1773_v52 = vsel %vm1770_vm4, %v4215_v40, %v4216_v39  ;;  %v5239_v37 = vmax.f32 %v1667_v18, %v4216_v39  ;;  %v1669_v50 = vmax.f32 %v5033_v55, %v4221_v41  ;;  %v1903_v56 = vsel %vm1039_vm1, %v1901_v1, %v1902_v38 }
 0x23c   : > { %v5243_v46 = vmax.f32 %v1666_v20, %v1773_v52  ;;  %v1611_v57 = vsel %vm1607_vm3, %v4220_v42, %v4221_v41  ;;  %v4224_v58 = vpop.permute.xlu0 %4223  ;;  %v4229_v22 = vpop.permute.xlu1 %4228  ;;  %v2005_v59 = vmax.f32 %v1826_v11, %v1903_v56  ;;  %v2046_v0 = vsel %vm2040_vm5, %v2044_v4, %v2045_v43 }
 0x23d   : > { %v1906_v19 = vrot.slane %v5239_v37, 1  ;;  %v1668_v8 = vmax.f32 %v5031_v36, %v1611_v57  ;;  %v4226_v3 = vunpack.i.h.bf16 %v4224_v58  ;;  %v4225_v18 = vunpack.i.l.bf16 %v4224_v58 }
 0x23e   : > { %v4231_v24 = vunpack.i.h.bf16 %v4229_v22  ;;  %v4230_v26 = vunpack.i.l.bf16 %v4229_v22  ;;  %v2049_v55 = vrot.slane %v5239_v37, 2  ;;  %v2148_v1 = vmax.f32 %v2005_v59, %v2046_v0 }
 0x23f   : > { %v1774_v20 = vsel %vm1770_vm4, %v4225_v18, %v4226_v3  ;;  %v5251_v39 = vmax.f32 %v1669_v50, %v4226_v3  ;;  %v1907_v11 = vsel %vm1039_vm1, %v1902_v38, %v1906_v19  ;;  %v1900_v4 = vsel %vm1039_vm1, %v1898_v17, %v1899_v49 }
 0x240   : > { %v5257_v40 = vmax.f32 %v1668_v8, %v1774_v20  ;;  %v1671_v36 = vmax.f32 %v5049_v12, %v4231_v24  ;;  %v1612_v41 = vsel %vm1607_vm3, %v4230_v26, %v4231_v24  ;;  %v4234_v42 = vpop.permute.xlu1 %4233  ;;  %v4239_v52 = vpop.permute.xlu0 %4238  ;;  %v2007_v56 = vmax.f32 %v5225_v16, %v1907_v11 }
 0x241   : > { %v1910_v57 = vrot.slane %v5251_v39, 1  ;;  %v2053_v50 = vrot.slane %v5251_v39, 2  ;;  %v1670_v58 = vmax.f32 %v5046_v9, %v1612_v41  ;;  %v4236_v22 = vunpack.i.h.bf16 %v4234_v42 }
 0x242   : > { %v4235_v17 = vunpack.i.l.bf16 %v4234_v42  ;;  %v4241_v59 = vunpack.i.h.bf16 %v4239_v52  ;;  %v4240_v0 = vunpack.i.l.bf16 %v4239_v52  ;;  %v2050_v12 = vsel %vm2040_vm5, %v2045_v43, %v2049_v55 }
 0x243   : > { %v5266_v8 = vmax.f32 %v1671_v36, %v4236_v22  ;;  %v1904_v16 = vrot.slane %v5243_v46, 1  ;;  %v2004_v3 = vmax.f32 %v5219_v25, %v1900_v4  ;;  %v2150_v11 = vmax.f32 %v2007_v56, %v2050_v12 }
 0x244   : > { %v1775_v18 = vsel %vm1770_vm4, %v4235_v17, %v4236_v22  ;;  %v1673_v9 = vmax.f32 %v5057_v23, %v4241_v59  ;;  %v1613_v24 = vsel %vm1607_vm3, %v4240_v0, %v4241_v59  ;;  %v4244_v26 = vpop.permute.xlu0 %4243  ;;  %v4249_v20 = vpop.permute.xlu1 %4248  ;;  %v2043_v56 = vsel %vm2040_vm5, %v2041_v27, %v2042_v51 }
 0x245   : > { %v5276_v41 = vmax.f32 %v1670_v58, %v1775_v18  ;;  %v1914_v36 = vrot.slane %v5266_v8, 1  ;;  %v2057_v42 = vrot.slane %v5266_v8, 2  ;;  %v1672_v43 = vmax.f32 %v5055_v21, %v1613_v24 }
 0x246   : > { %v4246_v52 = vunpack.i.h.bf16 %v4244_v26  ;;  %v4245_v2 = vunpack.i.l.bf16 %v4244_v26  ;;  %v4251_v4 = vunpack.i.h.bf16 %v4249_v20  ;;  %v4250_v38 = vunpack.i.l.bf16 %v4249_v20 }
 0x247   : > { %v1912_v22 = vrot.slane %v5276_v41, 1  ;;  %v2191_v23 = vpack.c.bf16 %v2150_v11, %v2148_v1  ;;  %v1905_v17 = vsel %vm1039_vm1, %v1899_v49, %v1904_v16  ;;  %v2047_v25 = vrot.slane %v5243_v46, 2 }
 0x248   : > { %v1776_v58 = vsel %vm1770_vm4, %v4245_v2, %v4246_v52  ;;  %v5291_v21 = vmax.f32 %v1673_v9, %v4246_v52  ;;  %v1675_v59 = vmax.f32 %v5073_v48, %v4251_v4  ;;  %v1614_v0 = vsel %vm1607_vm3, %v4250_v38, %v4251_v4  ;;  %v4254_v12 = vpop.permute.xlu1 %4253  ;;  %v4259_v1 = vpop.permute.xlu0 %4258 }
 0x249   : > { %v5295_v18 = vmax.f32 %v1672_v43, %v1776_v58  ;;  %v1674_v49 = vmax.f32 %v5070_v45, %v1614_v0  ;;  %2260 = vmatprep.subr.bf16.mxu1 %v2191_v23  ;;  %v2006_v24 = vmax.f32 %v5229_v30, %v1905_v17  ;;  %v2147_v9 = vmax.f32 %v2004_v3, %v2043_v56 }
 0x24a   : > { %v1918_v27 = vrot.slane %v5291_v21, 1  ;;  %v2061_v2 = vrot.slane %v5291_v21, 2  ;;  %v4256_v26 = vunpack.i.h.bf16 %v4254_v12  ;;  %v2048_v38 = vsel %vm2040_vm5, %v2042_v51, %v2047_v25 }
 0x24b   : > { %v1916_v48 = vrot.slane %v5295_v18, 1  ;;  %v4255_v20 = vunpack.i.l.bf16 %v4254_v12  ;;  %v4261_v11 = vunpack.i.h.bf16 %v4259_v1  ;;  %v2149_v45 = vmax.f32 %v2006_v24, %v2048_v38 }
 0x24c   : > { %v5306_v43 = vmax.f32 %v1675_v59, %v4256_v26  ;;  %v4260_v52 = vunpack.i.l.bf16 %v4259_v1  ;;  %v4264_v4 = vpop.permute.xlu0 %4263  ;;  %v4269_v23 = vpop.permute.xlu1 %4268  ;;  %v1911_v3 = vsel %vm1039_vm1, %v1906_v19, %v1910_v57 }
 0x24d   : > { %v1777_v17 = vsel %vm1770_vm4, %v4255_v20, %v4256_v26  ;;  %v1677_v30 = vmax.f32 %v5081_v54, %v4261_v11  ;;  %v4266_v56 = vunpack.i.h.bf16 %v4264_v4  ;;  %v4265_v51 = vunpack.i.l.bf16 %v4264_v4 }
 0x24e   : > { %v2190_v58 = vpack.c.bf16 %v2149_v45, %v2147_v9  ;;  %v5315_v0 = vmax.f32 %v1674_v49, %v1777_v17  ;;  %v1922_v59 = vrot.slane %v5306_v43, 1  ;;  %v2065_v12 = vrot.slane %v5306_v43, 2 }
 0x24f   : > { %v1615_v1 = vsel %vm1607_vm3, %v4260_v52, %v4261_v11  ;;  %v1778_v24 = vsel %vm1770_vm4, %v4265_v51, %v4266_v56  ;;  %v5321_v38 = vmax.f32 %v1677_v30, %v4266_v56  ;;  %v4271_v19 = vunpack.i.h.bf16 %v4269_v23 }
 0x250   : > { %2261 = vmatpush1.bf16.msra.mxu1 %v2190_v58  ;;  %v1920_v26 = vrot.slane %v5315_v0, 1  ;;  %v1676_v54 = vmax.f32 %v5079_v32, %v1615_v1  ;;  %v4270_v20 = vunpack.i.l.bf16 %v4269_v23  ;;  %v1915_v49 = vsel %vm1039_vm1, %v1910_v57, %v1914_v36  ;;  %v4274_v9 = vpop.permute.xlu1 %4273  ;;  %v4279_v45 = vpop.permute.xlu0 %4278 }
 0x251   : > { %v1926_v11 = vrot.slane %v5321_v38, 1  ;;  %v1679_v4 = vmax.f32 %v5097_v14, %v4271_v19  ;;  %v2009_v17 = vmax.f32 %v5239_v37, %v1911_v3  ;;  %v2011_v23 = vmax.f32 %v5251_v39, %v1915_v49 }
 0x252   : > { %v5334_v30 = vmax.f32 %v1676_v54, %v1778_v24  ;;  %v1616_v32 = vsel %vm1607_vm3, %v4270_v20, %v4271_v19  ;;  %v2054_v57 = vsel %vm2040_vm5, %v2049_v55, %v2053_v50  ;;  %v2058_v14 = vsel %vm2040_vm5, %v2053_v50, %v2057_v42 }
 0x253   : > { %v1678_v56 = vmax.f32 %v5094_v10, %v1616_v32  ;;  %v2152_v3 = vmax.f32 %v2009_v17, %v2054_v57  ;;  %v6134_v51 = vrot.slane %v5257_v40, 1  ;;  %v2154_v37 = vmax.f32 %v2011_v23, %v2058_v14 }
 0x254   : > { %v4284_v24 = vpop.permute.xlu0 %4283  ;;  %v4289_v50 = vpop.permute.xlu1 %4288  ;;  %v2051_v54 = vrot.slane %v5257_v40, 2  ;;  %v2055_v20 = vrot.slane %v5276_v41, 2  ;;  %v4275_v17 = vunpack.i.l.bf16 %v4274_v9  ;;  %v4281_v32 = vunpack.i.h.bf16 %v4279_v45 }
 0x255   : > { %v1909_v58 = vsel %vm1039_vm1, %v1904_v16, %v6134_v51  ;;  %v6135_v10 = vmov %v6134_v51  ;;  %v4276_v16 = vunpack.i.h.bf16 %v4274_v9  ;;  %v2193_v49 = vpack.c.bf16 %v2154_v37, %v2152_v3 }
 0x256   : > { %v1913_v55 = vsel %vm1039_vm1, %v6135_v10, %v1912_v22  ;;  %v2008_v39 = vmax.f32 %v5243_v46, %v1909_v58  ;;  %v4280_v23 = vunpack.i.l.bf16 %v4279_v45  ;;  %v2052_v57 = vsel %vm2040_vm5, %v2047_v25, %v2051_v54 }
 0x257   : > { %v2010_v19 = vmax.f32 %v5257_v40, %v1913_v55  ;;  %v2056_v14 = vsel %vm2040_vm5, %v2051_v54, %v2055_v20  ;;  %v5366_v51 = vmax.f32 %v1679_v4, %v4276_v16  ;;  %v4286_v46 = vunpack.i.h.bf16 %v4284_v24  ;;  %2262 = vmatprep.subr.bf16.mxu1 %v2193_v49 }
 0x258   : > { %v2151_v58 = vmax.f32 %v2008_v39, %v2052_v57  ;;  %v1779_v55 = vsel %vm1770_vm4, %v4275_v17, %v4276_v16  ;;  %v1681_v40 = vmax.f32 %v5105_v29, %v4281_v32  ;;  %v4294_v1 = vpop.permute.xlu1 %4293  ;;  %v4299_v52 = vpop.permute.xlu0 %4298  ;;  %v1617_v45 = vsel %vm1607_vm3, %v4280_v23, %v4281_v32 }
 0x259   : > { %v2153_v10 = vmax.f32 %v2010_v19, %v2056_v14  ;;  %v5370_v3 = vmax.f32 %v1678_v56, %v1779_v55  ;;  %v1930_v9 = vrot.slane %v5366_v51, 1  ;;  %v2073_v25 = vrot.slane %v5366_v51, 2 }
 0x25a   : > { %v1680_v37 = vmax.f32 %v5103_v28, %v1617_v45  ;;  %v4285_v54 = vunpack.i.l.bf16 %v4284_v24  ;;  %v5376_v39 = vmax.f32 %v1681_v40, %v4286_v46  ;;  %v4291_v16 = vunpack.i.h.bf16 %v4289_v50 }
 0x25b   : > { %v2192_v4 = vpack.c.bf16 %v2153_v10, %v2151_v58  ;;  %v1928_v19 = vrot.slane %v5370_v3, 1  ;;  %v4290_v29 = vunpack.i.l.bf16 %v4289_v50  ;;  %v1919_v56 = vsel %vm1039_vm1, %v1914_v36, %v1918_v27 }
 0x25c   : > { %v1780_v49 = vsel %vm1770_vm4, %v4285_v54, %v4286_v46  ;;  %v1934_v17 = vrot.slane %v5376_v39, 1  ;;  %v2077_v28 = vrot.slane %v5376_v39, 2  ;;  %v1923_v24 = vsel %vm1039_vm1, %v1918_v27, %v1922_v59  ;;  %v4304_v27 = vpop.permute.xlu0 %4303  ;;  %v4309_v58 = vpop.permute.xlu1 %4308 }
 0x25d   : > { %2263 = vmatpush1.bf16.msra.mxu1 %v2192_v4  ;;  %v5392_v50 = vmax.f32 %v1680_v37, %v1780_v49  ;;  %v1683_v32 = vmax.f32 %v5121_v53, %v4291_v16  ;;  %v1618_v23 = vsel %vm1607_vm3, %v4290_v29, %v4291_v16  ;;  %v2013_v36 = vmax.f32 %v5266_v8, %v1919_v56 }
 0x25e   : > { %v1682_v57 = vmax.f32 %v5118_v15, %v1618_v23  ;;  %v2015_v14 = vmax.f32 %v5291_v21, %v1923_v24  ;;  %v2062_v46 = vsel %vm2040_vm5, %v2057_v42, %v2061_v2  ;;  %v2066_v53 = vsel %vm2040_vm5, %v2061_v2, %v2065_v12 }
 0x25f   : > { %v1932_v10 = vrot.slane %v5392_v50, 1  ;;  %v2156_v55 = vmax.f32 %v2013_v36, %v2062_v46  ;;  %v1917_v15 = vsel %vm1039_vm1, %v1912_v22, %v1916_v48  ;;  %v1921_v8 = vsel %vm1039_vm1, %v1916_v48, %v1920_v26 }
 0x260   : > { %v2158_v42 = vmax.f32 %v2015_v14, %v2066_v53  ;;  %v2012_v21 = vmax.f32 %v5276_v41, %v1917_v15  ;;  %v2014_v2 = vmax.f32 %v5295_v18, %v1921_v8  ;;  %v2059_v40 = vrot.slane %v5295_v18, 2  ;;  %v4314_v14 = vpop.permute.xlu1 %4313  ;;  %v4319_v46 = vpop.permute.xlu0 %4318 }
 0x261   : > { %v2063_v45 = vrot.slane %v5315_v0, 2  ;;  %v4296_v4 = vunpack.i.h.bf16 %v4294_v1  ;;  %v4295_v37 = vunpack.i.l.bf16 %v4294_v1  ;;  %v4301_v54 = vunpack.i.h.bf16 %v4299_v52 }
 0x262   : > { %v2195_v16 = vpack.c.bf16 %v2158_v42, %v2156_v55  ;;  %v2060_v22 = vsel %vm2040_vm5, %v2055_v20, %v2059_v40  ;;  %v4300_v29 = vunpack.i.l.bf16 %v4299_v52  ;;  %v4306_v56 = vunpack.i.h.bf16 %v4304_v27 }
 0x263   : > { %v2064_v49 = vsel %vm2040_vm5, %v2059_v40, %v2063_v45  ;;  %v2155_v48 = vmax.f32 %v2012_v21, %v2060_v22  ;;  %v1781_v24 = vsel %vm1770_vm4, %v4295_v37, %v4296_v4  ;;  %v5427_v41 = vmax.f32 %v1683_v32, %v4296_v4 }
 0x264   : > { %2264 = vmatprep.subr.bf16.mxu1 %v2195_v16  ;;  %v2157_v23 = vmax.f32 %v2014_v2, %v2064_v49  ;;  %v5429_v18 = vmax.f32 %v1682_v57, %v1781_v24  ;;  %v1685_v36 = vmax.f32 %v5129_v63, %v4301_v54  ;;  %v1619_v1 = vsel %vm1607_vm3, %v4300_v29, %v4301_v54 }
 0x265   : > { %v1938_v52 = vrot.slane %v5427_v41, 1  ;;  %v2081_v20 = vrot.slane %v5427_v41, 2  ;;  %v1684_v53 = vmax.f32 %v5127_v60, %v1619_v1  ;;  %v4305_v55 = vunpack.i.l.bf16 %v4304_v27 }
 0x266   : > { %v2194_v15 = vpack.c.bf16 %v2157_v23, %v2155_v48  ;;  %v1936_v32 = vrot.slane %v5429_v18, 1  ;;  %v5437_v8 = vmax.f32 %v1685_v36, %v4306_v56  ;;  %v4311_v57 = vunpack.i.h.bf16 %v4309_v58  ;;  %v4324_v48 = vpop.permute.xlu0 %4323 }
 0x267   : > { %v1782_v42 = vsel %vm1770_vm4, %v4305_v55, %v4306_v56  ;;  %v4310_v63 = vunpack.i.l.bf16 %v4309_v58  ;;  %v1927_v21 = vsel %vm1039_vm1, %v1922_v59, %v1926_v11  ;;  %v1931_v60 = vsel %vm1039_vm1, %v1926_v11, %v1930_v9 }
 0x268   : > { %2265 = vmatpush1.bf16.msra.mxu1 %v2194_v15  ;;  %v5450_v27 = vmax.f32 %v1684_v53, %v1782_v42  ;;  %v1942_v2 = vrot.slane %v5437_v8, 1  ;;  %v2085_v40 = vrot.slane %v5437_v8, 2  ;;  %v1687_v58 = vmax.f32 %v5145_v35, %v4311_v57 }
 0x269   : > { %v1620_v4 = vsel %vm1607_vm3, %v4310_v63, %v4311_v57  ;;  %v2017_v37 = vmax.f32 %v5306_v43, %v1927_v21  ;;  %v2019_v59 = vmax.f32 %v5321_v38, %v1931_v60  ;;  %v6136_v54 = vrot.slane %v5321_v38, 2  ;;  %v4329_v43 = vpop.permute.xlu1 %4328 }
 0x26a   : > { %v1940_v16 = vrot.slane %v5450_v27, 1  ;;  %v1686_v22 = vmax.f32 %v5142_v33, %v1620_v4  ;;  %v6138_v56 = vrot.slane %v5334_v30, 1  ;;  %v2067_v1 = vrot.slane %v5334_v30, 2 }
 0x26b   : > { %v2070_v11 = vsel %vm2040_vm5, %v2065_v12, %v6136_v54  ;;  %v6137_v35 = vmov %v6136_v54  ;;  %v2071_v53 = vrot.slane %v5370_v3, 2  ;;  %v4316_v55 = vunpack.i.h.bf16 %v4314_v14 }
 0x26c   : > { %v2074_v29 = vsel %vm2040_vm5, %v6137_v35, %v2073_v25  ;;  %v1925_v49 = vsel %vm1039_vm1, %v1920_v26, %v6138_v56  ;;  %v2160_v24 = vmax.f32 %v2017_v37, %v2070_v11  ;;  %v6139_v33 = vmov %v6138_v56  ;;  %v4339_v35 = vpop.permute.xlu0 %4338 }
 0x26d   : > { %v2162_v12 = vmax.f32 %v2019_v59, %v2074_v29  ;;  %v1929_v23 = vsel %vm1039_vm1, %v6139_v33, %v1928_v19  ;;  %v2016_v38 = vmax.f32 %v5315_v0, %v1925_v49  ;;  %v4315_v15 = vunpack.i.l.bf16 %v4314_v14  ;;  %v4334_v11 = vpop.permute.xlu1 %4333 }
 0x26e   : > { %v2018_v36 = vmax.f32 %v5334_v30, %v1929_v23  ;;  %v4321_v57 = vunpack.i.h.bf16 %v4319_v46  ;;  %v4320_v42 = vunpack.i.l.bf16 %v4319_v46  ;;  %v2068_v63 = vsel %vm2040_vm5, %v2063_v45, %v2067_v1 }
 0x26f   : > { %v2197_v26 = vpack.c.bf16 %v2162_v12, %v2160_v24  ;;  %v2072_v21 = vsel %vm2040_vm5, %v2067_v1, %v2071_v53  ;;  %v5486_v60 = vmax.f32 %v1687_v58, %v4316_v55  ;;  %v4326_v4 = vunpack.i.h.bf16 %v4324_v48 }
 0x270   : > { %v2159_v0 = vmax.f32 %v2016_v38, %v2068_v63  ;;  %v2161_v37 = vmax.f32 %v2018_v36, %v2072_v21  ;;  %v1783_v59 = vsel %vm1770_vm4, %v4315_v15, %v4316_v55  ;;  %v1689_v30 = vmax.f32 %v5153_v47, %v4321_v57 }
 0x271   : > { %2266 = vmatprep.subr.bf16.mxu1 %v2197_v26  ;;  %v5490_v54 = vmax.f32 %v1686_v22, %v1783_v59  ;;  %v1946_v14 = vrot.slane %v5486_v60, 1  ;;  %v2089_v46 = vrot.slane %v5486_v60, 2  ;;  %v1621_v45 = vsel %vm1607_vm3, %v4320_v42, %v4321_v57  ;;  %v4349_v57 = vpop.permute.xlu1 %4348 }
 0x272   : > { %v2196_v58 = vpack.c.bf16 %v2161_v37, %v2159_v0  ;;  %v1688_v29 = vmax.f32 %v5151_v44, %v1621_v45  ;;  %v4325_v56 = vunpack.i.l.bf16 %v4324_v48  ;;  %v5496_v49 = vmax.f32 %v1689_v30, %v4326_v4 }
 0x273   : > { %v1944_v24 = vrot.slane %v5490_v54, 1  ;;  %v4331_v12 = vunpack.i.h.bf16 %v4329_v43  ;;  %v4330_v47 = vunpack.i.l.bf16 %v4329_v43  ;;  %v1935_v22 = vsel %vm1039_vm1, %v1930_v9, %v1934_v17 }
 0x274   : > { %2267 = vmatpush1.bf16.msra.mxu1 %v2196_v58  ;;  %v1784_v33 = vsel %vm1770_vm4, %v4325_v56, %v4326_v4  ;;  %v1950_v23 = vrot.slane %v5496_v49, 1  ;;  %v2093_v44 = vrot.slane %v5496_v49, 2  ;;  %v1939_v48 = vsel %vm1039_vm1, %v1934_v17, %v1938_v52 }
 0x275   : > { %v5512_v43 = vmax.f32 %v1688_v29, %v1784_v33  ;;  %v1691_v38 = vmax.f32 %v5169_v13, %v4331_v12  ;;  %v1622_v36 = vsel %vm1607_vm3, %v4330_v47, %v4331_v12  ;;  %v2021_v9 = vmax.f32 %v5366_v51, %v1935_v22  ;;  %v4354_v33 = vpop.permute.xlu1 %4353 }
 0x276   : > { %v1690_v1 = vmax.f32 %v5166_v7, %v1622_v36  ;;  %v2023_v55 = vmax.f32 %v5376_v39, %v1939_v48  ;;  %v2078_v26 = vsel %vm2040_vm5, %v2073_v25, %v2077_v28  ;;  %v2082_v13 = vsel %vm2040_vm5, %v2077_v28, %v2081_v20  ;;  %v4344_v25 = vpop.permute.xlu0 %4343 }
 0x277   : > { %v1948_v17 = vrot.slane %v5512_v43, 1  ;;  %v2164_v15 = vmax.f32 %v2021_v9, %v2078_v26  ;;  %v1933_v7 = vsel %vm1039_vm1, %v1928_v19, %v1932_v10  ;;  %v1937_v51 = vsel %vm1039_vm1, %v1932_v10, %v1936_v32 }
 0x278   : > { %v2166_v39 = vmax.f32 %v2023_v55, %v2082_v13  ;;  %v2020_v28 = vmax.f32 %v5370_v3, %v1933_v7  ;;  %v2022_v42 = vmax.f32 %v5392_v50, %v1937_v51  ;;  %v2075_v63 = vrot.slane %v5392_v50, 2 }
 0x279   : > { %v2079_v21 = vrot.slane %v5429_v18, 2  ;;  %v4336_v4 = vunpack.i.h.bf16 %v4334_v11  ;;  %v4335_v0 = vunpack.i.l.bf16 %v4334_v11  ;;  %v4341_v19 = vunpack.i.h.bf16 %v4339_v35 }
 0x27a   : > { %v2199_v37 = vpack.c.bf16 %v2166_v39, %v2164_v15  ;;  %v2076_v59 = vsel %vm2040_vm5, %v2071_v53, %v2075_v63  ;;  %v4340_v30 = vunpack.i.l.bf16 %v4339_v35  ;;  %v4346_v45 = vunpack.i.h.bf16 %v4344_v25 }
 0x27b   : > { %v2080_v10 = vsel %vm2040_vm5, %v2075_v63, %v2079_v21  ;;  %v2163_v58 = vmax.f32 %v2020_v28, %v2076_v59  ;;  %v1785_v29 = vsel %vm1770_vm4, %v4335_v0, %v4336_v4  ;;  %v5547_v3 = vmax.f32 %v1691_v38, %v4336_v4 }
 0x27c   : > { %2268 = vmatprep.subr.bf16.mxu1 %v2199_v37  ;;  %v2165_v56 = vmax.f32 %v2022_v42, %v2080_v10  ;;  %v5549_v50 = vmax.f32 %v1690_v1, %v1785_v29  ;;  %v1693_v12 = vmax.f32 %v5177_v34, %v4341_v19  ;;  %v1623_v11 = vsel %vm1607_vm3, %v4340_v30, %v4341_v19  ;;  %v4359_v42 = vpop.permute.xlu0 %4358 }
 0x27d   : > { %v1954_v47 = vrot.slane %v5547_v3, 1  ;;  %v2097_v53 = vrot.slane %v5547_v3, 2  ;;  %v1692_v35 = vmax.f32 %v5175_v31, %v1623_v11  ;;  %v4345_v22 = vunpack.i.l.bf16 %v4344_v25 }
 0x27e   : > { %v2198_v48 = vpack.c.bf16 %v2165_v56, %v2163_v58  ;;  %v1952_v38 = vrot.slane %v5549_v50, 1  ;;  %v5557_v36 = vmax.f32 %v1693_v12, %v4346_v45  ;;  %v4351_v9 = vunpack.i.h.bf16 %v4349_v57 }
 0x27f   : > { %v1786_v1 = vsel %vm1770_vm4, %v4345_v22, %v4346_v45  ;;  %v4350_v55 = vunpack.i.l.bf16 %v4349_v57  ;;  %v1943_v34 = vsel %vm1039_vm1, %v1938_v52, %v1942_v2  ;;  %v1947_v31 = vsel %vm1039_vm1, %v1942_v2, %v1946_v14 }
 0x280   : > { %2269 = vmatpush1.bf16.msra.mxu1 %v2198_v48  ;;  %v5570_v26 = vmax.f32 %v1692_v35, %v1786_v1  ;;  %v1958_v13 = vrot.slane %v5557_v36, 1  ;;  %v2101_v15 = vrot.slane %v5557_v36, 2  ;;  %v1695_v7 = vmax.f32 %v5193_v62, %v4351_v9 }
 0x281   : > { %v1624_v51 = vsel %vm1607_vm3, %v4350_v55, %v4351_v9  ;;  %v2025_v25 = vmax.f32 %v5427_v41, %v1943_v34  ;;  %v2027_v52 = vmax.f32 %v5437_v8, %v1947_v31  ;;  %v2086_v2 = vsel %vm2040_vm5, %v2081_v20, %v2085_v40  ;;  %v4364_v8 = vpop.permute.xlu1 %4363 }
 0x282   : > { %v1956_v57 = vrot.slane %v5570_v26, 1  ;;  %v1694_v39 = vmax.f32 %v5190_v61, %v1624_v51  ;;  %v2090_v62 = vsel %vm2040_vm5, %v2085_v40, %v2089_v46  ;;  %v1941_v28 = vsel %vm1039_vm1, %v1936_v32, %v1940_v16 }
 0x283   : > { %v2168_v41 = vmax.f32 %v2025_v25, %v2086_v2  ;;  %v2170_v63 = vmax.f32 %v2027_v52, %v2090_v62  ;;  %v1945_v61 = vsel %vm1039_vm1, %v1940_v16, %v1944_v24  ;;  %v2024_v20 = vmax.f32 %v5429_v18, %v1941_v28 }
 0x284   : > { %v2026_v40 = vmax.f32 %v5450_v27, %v1945_v61  ;;  %v2083_v4 = vrot.slane %v5450_v27, 2  ;;  %v2087_v0 = vrot.slane %v5490_v54, 2  ;;  %v4356_v19 = vunpack.i.h.bf16 %v4354_v33 }
 0x285   : > { %v2201_v32 = vpack.c.bf16 %v2170_v63, %v2168_v41  ;;  %v4355_v37 = vunpack.i.l.bf16 %v4354_v33  ;;  %v4361_v59 = vunpack.i.h.bf16 %v4359_v42  ;;  %v4360_v30 = vunpack.i.l.bf16 %v4359_v42 }
 0x286   : > { %v2084_v45 = vsel %vm2040_vm5, %v2079_v21, %v2083_v4  ;;  %v2088_v10 = vsel %vm2040_vm5, %v2083_v4, %v2087_v0  ;;  %v5606_v58 = vmax.f32 %v1695_v7, %v4356_v19  ;;  %v4366_v16 = vunpack.i.h.bf16 %v4364_v8 }
 0x287   : > { %2270 = vmatprep.subr.bf16.mxu1 %v2201_v32  ;;  %v2167_v18 = vmax.f32 %v2024_v20, %v2084_v45  ;;  %v2169_v29 = vmax.f32 %v2026_v40, %v2088_v10  ;;  %v1787_v56 = vsel %vm1770_vm4, %v4355_v37, %v4356_v19  ;;  %v1697_v27 = vmax.f32 %v5200_v6, %v4361_v59 }
 0x288   : > { %v5610_v12 = vmax.f32 %v1694_v39, %v1787_v56  ;;  %v1962_v11 = vrot.slane %v5606_v58, 1  ;;  %v2105_v35 = vrot.slane %v5606_v58, 2  ;;  %v1625_v21 = vsel %vm1607_vm3, %v4360_v30, %v4361_v59 }
 0x289   : > { %v2200_v22 = vpack.c.bf16 %v2169_v29, %v2167_v18  ;;  %v1696_v33 = vmax.f32 %v5198_v5, %v1625_v21  ;;  %v4365_v48 = vunpack.i.l.bf16 %v4364_v8  ;;  %v1860_v9 = vmax.f32 %v1697_v27, %v4366_v16 }
 0x28a   : > { %v1960_v1 = vrot.slane %v5610_v12, 1  ;;  %v1951_v6 = vsel %vm1039_vm1, %v1946_v14, %v1950_v23  ;;  %v1955_v55 = vsel %vm1039_vm1, %v1950_v23, %v1954_v47  ;;  %v2094_v5 = vsel %vm2040_vm5, %v2089_v46, %v2093_v44 }
 0x28b   : > { %2271 = vmatpush1.bf16.msra.mxu1 %v2200_v22  ;;  %v1788_v34 = vsel %vm1770_vm4, %v4365_v48, %v4366_v16  ;;  %v1966_v31 = vrot.slane %v1860_v9, 1  ;;  %v2109_v7 = vrot.slane %v1860_v9, 2  ;;  %v2029_v51 = vmax.f32 %v5486_v60, %v1951_v6 }
 0x28c   : > { %v1859_v14 = vmax.f32 %v1696_v33, %v1788_v34  ;;  %v2031_v25 = vmax.f32 %v5496_v49, %v1955_v55  ;;  %v2098_v23 = vsel %vm2040_vm5, %v2093_v44, %v2097_v53  ;;  %v1949_v46 = vsel %vm1039_vm1, %v1944_v24, %v1948_v17  ;;  %v4460_v55 = vld [vmem:[%s6116_s5 + $0x50] sm:$0xff]   ;;  %v4454_v34 = vld [vmem:[%s6115_s4 + $0x24] ss:$8 sps:$4 sm:$0xff]  }
 0x28d   : > { %v1967_v52 = vsel %vm1039_vm1, %v1962_v11, %v1966_v31  ;;  %v2039_v2 = vmax.f32 %v1860_v9, %v1966_v31  ;;  %v2172_v39 = vmax.f32 %v2029_v51, %v2094_v5  ;;  %v1953_v60 = vsel %vm1039_vm1, %v1948_v17, %v1952_v38  ;;  %v4448_v9 = vld [vmem:[%s6115_s4] ss:$8 sps:$4 sm:$0xff]   ;;  %v4453_v5 = vld [vmem:[%s6115_s4 + $0x10] ss:$8 sps:$4 sm:$0xff]  }
 0x28e   : > { %v2174_v62 = vmax.f32 %v2031_v25, %v2098_v23  ;;  %v2028_v49 = vmax.f32 %v5490_v54, %v1949_v46  ;;  %v2030_v44 = vmax.f32 %v5512_v43, %v1953_v60  ;;  %v2091_v28 = vrot.slane %v5512_v43, 2  ;;  %v4461_v31 = vld [vmem:[%s6116_s5 + $0x58] sm:$0xff]   ;;  %v2189_v51 = vld [vmem:[%s6115_s4 + $0x30] sm:$0xff]  ;;  %v4463_v46 = vld [vmem:[%s6116_s5 + $0x68] sm:$0xff]  }
 0x28f   : > { %v2182_v42 = vmax.f32 %v2039_v2, %v2109_v7  ;;  %v2095_v24 = vrot.slane %v5549_v50, 2  ;;  %v1959_v41 = vsel %vm1039_vm1, %v1954_v47, %v1958_v13  ;;  %v1963_v17 = vsel %vm1039_vm1, %v1958_v13, %v1962_v11  ;;  %v4465_v2 = vld [vmem:[%s6116_s5 + $0x78] sm:$0xff]   ;;  %v4467_v60 = vld [vmem:[%s6116_s5 + $0x88] sm:$0x3f]  }
 0x290   : > { %v2203_v63 = vpack.c.bf16 %v2174_v62, %v2172_v39  ;;  %v2092_v54 = vsel %vm2040_vm5, %v2087_v0, %v2091_v28  ;;  %v2033_v61 = vmax.f32 %v5547_v3, %v1959_v41  ;;  %v2035_v43 = vmax.f32 %v5557_v36, %v1963_v17  ;;  %v4466_v39 = vld [vmem:[%s6116_s5 + $0x80] sm:$0xff]  }
 0x291   : > { %v2096_v20 = vsel %vm2040_vm5, %v2091_v28, %v2095_v24  ;;  %v2171_v8 = vmax.f32 %v2028_v49, %v2092_v54  ;;  %v2102_v47 = vsel %vm2040_vm5, %v2097_v53, %v2101_v15  ;;  %v2106_v13 = vsel %vm2040_vm5, %v2101_v15, %v2105_v35 }
 0x292   : > { %2272 = vmatprep.subr.bf16.mxu1 %v2203_v63  ;;  %v2173_v40 = vmax.f32 %v2030_v44, %v2096_v20  ;;  %v2176_v4 = vmax.f32 %v2033_v61, %v2102_v47  ;;  %v2178_v0 = vmax.f32 %v2035_v43, %v2106_v13  ;;  %v1957_v19 = vsel %vm1039_vm1, %v1952_v38, %v1956_v57 }
 0x293   : > { %v1961_v3 = vsel %vm1039_vm1, %v1956_v57, %v1960_v1  ;;  %v2032_v53 = vmax.f32 %v5549_v50, %v1957_v19  ;;  %v2099_v36 = vrot.slane %v5570_v26, 2  ;;  %v2103_v15 = vrot.slane %v5610_v12, 2 }
 0x294   : > { %v2202_v32 = vpack.c.bf16 %v2173_v40, %v2171_v8  ;;  %v2205_v37 = vpack.c.bf16 %v2178_v0, %v2176_v4  ;;  %v2034_v59 = vmax.f32 %v5570_v26, %v1961_v3  ;;  %v2037_v30 = vmax.f32 %v5606_v58, %v1967_v52  ;;  %v4464_v52 = vld [vmem:[%s6116_s5 + $0x70] sm:$0xff]  }
 0x295   : > { %v2100_v45 = vsel %vm2040_vm5, %v2095_v24, %v2099_v36  ;;  %v2104_v38 = vsel %vm2040_vm5, %v2099_v36, %v2103_v15  ;;  %v2110_v10 = vsel %vm2040_vm5, %v2105_v35, %v2109_v7  ;;  %v1964_v16 = vrot.slane %v1859_v14, 1  ;;  %v4462_v7 = vld [vmem:[%s6116_s5 + $0x60] sm:$0xff]  }
 0x296   : > { %2273 = vmatpush1.bf16.msra.mxu1 %v2202_v32  ;;  %v2175_v57 = vmax.f32 %v2032_v53, %v2100_v45  ;;  %v2177_v50 = vmax.f32 %v2034_v59, %v2104_v38  ;;  %v2180_v18 = vmax.f32 %v2037_v30, %v2110_v10  ;;  %v2107_v29 = vrot.slane %v1859_v14, 2 }
 0x297   : > { %2274 = vmatprep.subr.bf16.mxu1 %v2205_v37  ;;  %v1965_v56 = vsel %vm1039_vm1, %v1960_v1, %v1964_v16  ;;  %v2038_v27 = vmax.f32 %v1859_v14, %v1964_v16  ;;  %v4451_v1 = vld [vmem:[%s6115_s4 + $0x14] ss:$8 sps:$4 sm:$0xff]   ;;  %v6140_v6 = vmov 0   ;;  %v4456_v14 = vld [vmem:[%s6115_s4 + $0x20] ss:$8 sps:$4 sm:$0xff]   ;;  %v3767_v25 = vcombine.high %v2189_v51, %v2189_v51 }
 0x298   : > { %v2204_v11 = vpack.c.bf16 %v2177_v50, %v2175_v57  ;;  %v2207_v26 = vpack.c.bf16 %v2182_v42, %v2180_v18  ;;  %v2036_v58 = vmax.f32 %v5610_v12, %v1965_v56  ;;  %v2108_v21 = vsel %vm2040_vm5, %v2103_v15, %v2107_v29  ;;  %v4459_v12 = vld [vmem:[%s6116_s5 + $0x48] sm:$0xff]   ;;  %v4468_v18 = vld [vmem:[%s6116_s5] sm:$0xff]  }
 0x299   : > { %v2181_v22 = vmax.f32 %v2038_v27, %v2107_v29  ;;  %v3766_v23 = vcombine.low %v2189_v51, %v2189_v51  ;;  %v2508_v62 = vsel %vm2040_vm5, %v4467_v60, 0 }
 0x29a   : > { %2275 = vmatpush1.bf16.msra.mxu1 %v2204_v11  ;;  %v2179_v33 = vmax.f32 %v2036_v58, %v2108_v21  ;;  %v4469_v58 = vld [vmem:[%s6116_s5 + $0x8] sm:$0xff]  }
 0x29b   : > { %3768 = vmatprep.subr.msk.bf16.mxu1 %vm2040_vm5, %v2207_v26 }
 0x29c   : > { %v2206_v35 = vpack.c.bf16 %v2181_v22, %v2179_v33 }
 0x29e   : > { %v2255_v48 = vsel %vm2040_vm5, %v2206_v35, 0 }
 0x29f   : > { %2277 = vmatpush1.bf16.msra.mxu1 %v2255_v48 }
 0x2a0   : > { %2510 = vmatprep.subr.bf16.mxu1 %v6140_v6 }
 0x2a2   : > { %2293 = vmatmul.mubr.bf16.vlgmr.msra.gmra.mrb[0].mxu1 %v4448_v9 }
 0x2a3   : > { %3770 = vmatprep.mubr.msk.bf16.mxu1 %vm2241_vm2, %v4451_v1  ;;  %2511 = vmatpush1.bf16.msra.mxu1 %v4459_v12 }
 0x2a4   : > { %2512 = vmatprep.subr.bf16.mxu1 %v6140_v6 }
 0x2a7   : > { %2513 = vmatpush1.bf16.msra.mxu1 %v4460_v55 }
 0x2a8   : > { %2514 = vmatprep.subr.bf16.mxu1 %v6140_v6 }
 0x2aa   : > { %2303 = vmatmul.mubr.bf16.gmra.mrb[4].mxu1 %v4453_v5 }
 0x2ab   : > { %3771 = vmatprep.mubr.msk.bf16.mxu1 %vm2241_vm2, %v4454_v34  ;;  %2515 = vmatpush1.bf16.msra.mxu1 %v4461_v31 }
 0x2ac   : > { %2516 = vmatprep.subr.bf16.mxu1 %v6140_v6 }
 0x2af   : > { %2517 = vmatpush1.bf16.msra.mxu1 %v4462_v7 }
 0x2b0   : > { %2518 = vmatprep.subr.bf16.mxu1 %v6140_v6 }
 0x2b2   : > { %2313 = vmatmul.mubr.bf16.gmra.mrb[8].mxu1 %v4456_v14 }
 0x2b3   : > { %3772 = vmatprep.mubr.msk.bf16.mxu1 %vm2241_vm2, %v3767_v25  ;;  %2519 = vmatpush1.bf16.msra.mxu1 %v4463_v46 }
 0x2b4   : > { %2520 = vmatprep.subr.bf16.mxu1 %v6140_v6 }
 0x2b7   : > { %2521 = vmatpush1.bf16.msra.mxu1 %v4464_v52 }
 0x2b8   : > { %2522 = vmatprep.subr.bf16.mxu1 %v6140_v6 }
 0x2ba   : > { %2323 = vmatmul.mubr.bf16.gmra.mrb[12].mxu1 %v3766_v23  ;;  %v4470_v23 = vld [vmem:[%s6116_s5 + $0x10] sm:$0xff]  }
 0x2bb   : > { %2523 = vmatpush1.bf16.msra.mxu1 %v4465_v2 }
 0x2bc   : > { %2524 = vmatprep.subr.bf16.mxu1 %v6140_v6 }
 0x2bf   : > { %2525 = vmatpush1.bf16.msra.mxu1 %v4466_v39 }
 0x2c0   : > { %2526 = vmatprep.subr.bf16.mxu1 %v6140_v6 }
 0x2c3   : > { %2527 = vmatpush1.bf16.msra.mxu1 %v2508_v62 }
 0x2c4   : > { %2638 = vmatprep.subr.bf16.mxu1 %v6140_v6 }
 0x375   : > { %v2294_v49 = vpop.f32.mrb[0].mxu1 }
 0x376   : > { %v2296_v44 = vpop.f32.mrb[1].mxu1 }
 0x377   : > { %v2298_v28 = vpop.f32.mrb[2].mxu1 }
 0x378   : > { %v5755_v42 = vpack.c.bf16 %v2298_v28, %v2294_v49  ;;  %v2300_v24 = vpop.f32.mrb[3].mxu1 }
 0x379   : > { %v5757_v41 = vpack.c.bf16 %v2300_v24, %v2296_v44 }
 0x37a   : > { %v2379_v17 = vshll.u32 %v5755_v42, 16  ;;  %v2377_v4 = vshrl.u32 %v5755_v42, 16  ;;  %v2729_v0 = vrot.slane %v5755_v42, 1 }
 0x37b   : > { %v2391_v63 = vshll.u32 %v5757_v41, 16  ;;  %v2389_v53 = vshrl.u32 %v5757_v41, 16  ;;  %v2732_v15 = vrot.slane %v5757_v41, 1 }
 0x37c   : > { %v2381_v20 = vrot.slane %v2379_v17, 1 }
 0x37d   : > { %v2304_v54 = vpop.f32.mrb[4].mxu1  ;;  %v2393_v13 = vrot.slane %v2391_v63, 1  ;;  %v4471_v63 = vld [vmem:[%s6116_s5 + $0x18] sm:$0xff]  }
 0x37e   : > { %v2306_v61 = vpop.f32.mrb[5].mxu1  ;;  %v2382_v59 = vor.u32 %v2381_v20, %v2377_v4 }
 0x37f   : > { %v2308_v43 = vpop.f32.mrb[6].mxu1  ;;  %v2394_v38 = vor.u32 %v2393_v13, %v2389_v53  ;;  %v4473_v53 = vld [vmem:[%s6116_s5 + $0x28] sm:$0xff]  }
 0x380   : > { %v5761_v8 = vpack.c.bf16 %v2308_v43, %v2304_v54  ;;  %v2310_v47 = vpop.f32.mrb[7].mxu1 }
 0x381   : > { %v5763_v40 = vpack.c.bf16 %v2310_v47, %v2306_v61 }
 0x382   : > { %v2384_v19 = vshll.u32 %v5761_v8, 16  ;;  %v2730_v3 = vrot.slane %v5761_v8, 1  ;;  %v2400_v21 = vshrl.u32 %v5761_v8, 16 }
 0x383   : > { %v2396_v36 = vshll.u32 %v5763_v40, 16  ;;  %v2733_v32 = vrot.slane %v5763_v40, 1  ;;  %v2408_v35 = vshrl.u32 %v5763_v40, 16 }
 0x384   : > { %v2386_v37 = vrot.slane %v2384_v19, 1  ;;  %v5774_v30 = vsel %vm1039_vm1, %v2729_v0, %v2730_v3  ;;  %v4472_v19 = vld [vmem:[%s6116_s5 + $0x20] sm:$0xff]  }
 0x385   : > { %v2314_v45 = vpop.f32.mrb[8].mxu1  ;;  %v2398_v10 = vrot.slane %v2396_v36, 1  ;;  %v5777_v16 = vsel %vm1039_vm1, %v2732_v15, %v2733_v32  ;;  %v4474_v15 = vld [vmem:[%s6116_s5 + $0x30] sm:$0xff]  }
 0x386   : > { %v2316_v57 = vpop.f32.mrb[9].mxu1  ;;  %v2387_v50 = vsel %vm526_vm0, %v2382_v59, %v2386_v37  ;;  %v2402_v1 = vor.u32 %v2400_v21, %v2386_v37  ;;  %v4475_v37 = vld [vmem:[%s6116_s5 + $0x38] sm:$0xff]   ;;  %v4476_v59 = vld [vmem:[%s6116_s5 + $0x40] sm:$0x3f]  }
 0x387   : > { %v2318_v29 = vpop.f32.mrb[10].mxu1  ;;  %v2399_v56 = vsel %vm526_vm0, %v2394_v38, %v2398_v10  ;;  %v2410_v34 = vor.u32 %v2408_v35, %v2398_v10  ;;  %v4478_v38 = vld [vmem:[%s6116_s5 + $0x98] sm:$0xff]   ;;  %v4479_v10 = vld [vmem:[%s6116_s5 + $0xa0] sm:$0xff]  }
 0x388   : > { %v5784_v27 = vpack.c.bf16 %v2318_v29, %v2314_v45  ;;  %v2320_v11 = vpop.f32.mrb[11].mxu1  ;;  %3800 = vmatprep.mubr.msk.bf16.mxu1 %vm2241_vm2, %v2399_v56  ;;  %v2636_v45 = vsel %vm2040_vm5, %v4476_v59, 0  ;;  %v4489_v56 = vld [vmem:[%s6118_s7 + $0x40] sm:$0xff]  }
 0x389   : > { %v5787_v26 = vpack.c.bf16 %v2320_v11, %v2316_v57  ;;  %2543 = vmatmul.mubr.bf16.vlgmr.msra.gmra.mrb[16].mxu1 %v2387_v50  ;;  %v4483_v57 = vld [vmem:[%s6116_s5 + $0xc0] sm:$0xff]   ;;  %v4484_v50 = vld [vmem:[%s6116_s5 + $0xc8] sm:$0xff]  }
 0x38a   : > { %2639 = vmatpush1.bf16.msra.mxu1 %v4468_v18  ;;  %v2404_v22 = vshll.u32 %v5784_v27, 16  ;;  %v2735_v33 = vrot.slane %v5784_v27, 1  ;;  %v2416_v46 = vshrl.u32 %v5784_v27, 16  ;;  %v4485_v18 = vld [vmem:[%s6116_s5 + $0xd0] sm:$0x3f]   ;;  %v5944_v11 = vld [vmem:[%s6118_s7] sm:$0xff]  }
 0x38b   : > { %2640 = vmatprep.subr.bf16.mxu1 %v6140_v6  ;;  %v2412_v48 = vshll.u32 %v5787_v26, 16  ;;  %v2737_v9 = vrot.slane %v5787_v26, 1  ;;  %v2424_v52 = vshrl.u32 %v5787_v26, 16  ;;  %v2813_v29 = vsel %vm2040_vm5, %v4485_v18, 0 }
 0x38c   : > { %v2406_v12 = vrot.slane %v2404_v22, 1  ;;  %v5800_v55 = vsel %vm1039_vm1, %v2730_v3, %v2735_v33 }
 0x38d   : > { %v2324_v5 = vpop.f32.mrb[12].mxu1  ;;  %v2414_v31 = vrot.slane %v2412_v48, 1  ;;  %v5803_v7 = vsel %vm1039_vm1, %v2733_v32, %v2737_v9 }
 0x38e   : > { %v5805_v51 = vpack.c.bf16 %v2324_v5, %v2324_v5  ;;  %2641 = vmatpush1.bf16.msra.mxu1 %v4469_v58  ;;  %v2326_v14 = vpop.f32.mrb[13].mxu1  ;;  %v2407_v25 = vsel %vm526_vm0, %v2402_v1, %v2406_v12  ;;  %v2418_v54 = vor.u32 %v2416_v46, %v2406_v12 }
 0x38f   : > { %v5813_v2 = vpack.c.bf16 %v2326_v14, %v2326_v14  ;;  %v2415_v39 = vsel %vm526_vm0, %v2410_v34, %v2414_v31  ;;  %2642 = vmatprep.subr.bf16.mxu1 %v6140_v6  ;;  %v2328_v60 = vpop.f32.mrb[14].mxu1  ;;  %v2426_v20 = vor.u32 %v2424_v52, %v2414_v31 }
 0x390   : > { %3801 = vmatprep.mubr.msk.bf16.mxu1 %vm2241_vm2, %v2415_v39  ;;  %v2329_v62 = vpop.f32.mrb[15].mxu1  ;;  %v2420_v49 = vshll.u32 %v5805_v51, 16  ;;  %v2739_v44 = vrot.slane %v5805_v51, 1  ;;  %v2432_v36 = vshrl.u32 %v5805_v51, 16 }
 0x391   : > { %2551 = vmatmul.mubr.bf16.gmra.mrb[20].mxu1 %v2407_v25  ;;  %v2428_v28 = vshll.u32 %v5813_v2, 16  ;;  %v2741_v24 = vrot.slane %v5813_v2, 1  ;;  %v2435_v17 = vshrl.u32 %v5813_v2, 16 }
 0x392   : > { %2643 = vmatpush1.bf16.msra.mxu1 %v4470_v23  ;;  %v2422_v61 = vrot.slane %v2420_v49, 1  ;;  %v5829_v43 = vsel %vm1039_vm1, %v2735_v33, %v2739_v44 }
 0x393   : > { %2644 = vmatprep.subr.bf16.mxu1 %v6140_v6  ;;  %v2430_v47 = vrot.slane %v2428_v28, 1  ;;  %v5835_v13 = vsel %vm1039_vm1, %v2737_v9, %v2741_v24 }
 0x394   : > { %v2423_v4 = vsel %vm526_vm0, %v2418_v54, %v2422_v61  ;;  %v2434_v32 = vor.u32 %v2432_v36, %v2422_v61 }
 0x395   : > { %v2431_v0 = vsel %vm526_vm0, %v2426_v20, %v2430_v47  ;;  %v2437_v3 = vor.u32 %v2435_v17, %v2430_v47 }
 0x396   : > { %2645 = vmatpush1.bf16.msra.mxu1 %v4471_v63  ;;  %3802 = vmatprep.mubr.msk.bf16.mxu1 %vm2241_vm2, %v2431_v0 }
 0x397   : > { %2646 = vmatprep.subr.bf16.mxu1 %v6140_v6 }
 0x399   : > { %2559 = vmatmul.mubr.bf16.gmra.mrb[24].mxu1 %v2423_v4 }
 0x39a   : > { %2647 = vmatpush1.bf16.msra.mxu1 %v4472_v19  ;;  %3803 = vmatprep.mubr.msk.bf16.mxu1 %vm2241_vm2, %v2437_v3  ;;  %v5952_v3 = vld [vmem:[%s6117_s6] ss:$0 sm:$0xff] }
 0x39b   : > { %2648 = vmatprep.subr.bf16.mxu1 %v6140_v6 }
 0x39e   : > { %2649 = vmatpush1.bf16.msra.mxu1 %v4473_v53 }
 0x39f   : > { %2650 = vmatprep.subr.bf16.mxu1 %v6140_v6 }
 0x3a1   : > { %2567 = vmatmul.mubr.bf16.gmra.mrb[28].mxu1 %v2434_v32 }
 0x3a2   : > { %2651 = vmatpush1.bf16.msra.mxu1 %v4474_v15  ;;  %3813 = vmatprep.mubr.msk.bf16.mxu1 %vm2241_vm2, %v5757_v41  ;;  %v4477_v41 = vld [vmem:[%s6116_s5 + $0x90] sm:$0xff]  }
 0x3a3   : > { %2652 = vmatprep.subr.bf16.mxu1 %v6140_v6 }
 0x3a6   : > { %2653 = vmatpush1.bf16.msra.mxu1 %v4475_v37 }
 0x3a7   : > { %2654 = vmatprep.subr.bf16.mxu1 %v6140_v6 }
 0x3aa   : > { %2655 = vmatpush1.bf16.msra.mxu1 %v2636_v45  ;;  %v5955_v45 = vstv %s3848_s29 }
 0x3ab   : > { %2815 = vmatprep.subr.bf16.mxu1 %v6140_v6 }
 0x3ad   : > { %2671 = vmatmul.mubr.bf16.vlgmr.msra.gmra.mrb[32].mxu1 %v5755_v42  ;;  %v4480_v42 = vld [vmem:[%s6116_s5 + $0xa8] sm:$0xff]  }
 0x3ae   : > { %3814 = vmatprep.mubr.msk.bf16.mxu1 %vm2241_vm2, %v5763_v40  ;;  %2816 = vmatpush1.bf16.msra.mxu1 %v4477_v41  ;;  %v4481_v40 = vld [vmem:[%s6116_s5 + $0xb0] sm:$0xff]  }
 0x3af   : > { %2817 = vmatprep.subr.bf16.mxu1 %v6140_v6 }
 0x3b2   : > { %2818 = vmatpush1.bf16.msra.mxu1 %v4478_v38 }
 0x3b3   : > { %2819 = vmatprep.subr.bf16.mxu1 %v6140_v6 }
 0x3b5   : > { %2679 = vmatmul.mubr.bf16.gmra.mrb[36].mxu1 %v5761_v8  ;;  %v4482_v8 = vld [vmem:[%s6116_s5 + $0xb8] sm:$0xff]  }
 0x3b6   : > { %3815 = vmatprep.mubr.msk.bf16.mxu1 %vm2241_vm2, %v5787_v26  ;;  %2820 = vmatpush1.bf16.msra.mxu1 %v4479_v10 }
 0x3b7   : > { %2821 = vmatprep.subr.bf16.mxu1 %v6140_v6 }
 0x3ba   : > { %2822 = vmatpush1.bf16.msra.mxu1 %v4480_v42 }
 0x3bb   : > { %2823 = vmatprep.subr.bf16.mxu1 %v6140_v6 }
 0x3bd   : > { %2687 = vmatmul.mubr.bf16.gmra.mrb[40].mxu1 %v5784_v27  ;;  %v4490_v27 = vld [vmem:[%s6118_s7 + $0x48] sm:$0xff]  }
 0x3be   : > { %3816 = vmatprep.mubr.msk.bf16.mxu1 %vm2241_vm2, %v5813_v2  ;;  %2824 = vmatpush1.bf16.msra.mxu1 %v4481_v40 }
 0x3bf   : > { %2825 = vmatprep.subr.bf16.mxu1 %v6140_v6 }
 0x3c2   : > { %2826 = vmatpush1.bf16.msra.mxu1 %v4482_v8 }
 0x3c3   : > { %2827 = vmatprep.subr.bf16.mxu1 %v6140_v6 }
 0x3c5   : > { %2695 = vmatmul.mubr.bf16.gmra.mrb[44].mxu1 %v5805_v51 }
 0x3c6   : > { %2828 = vmatpush1.bf16.msra.mxu1 %v4483_v57  ;;  %3844 = vmatprep.mubr.msk.bf16.mxu1 %vm2241_vm2, %v5777_v16  ;;  %v4488_v16 = vld [vmem:[%s6118_s7 + $0x38] sm:$0xff]  }
 0x3c7   : > { %2829 = vmatprep.subr.bf16.mxu1 %v6140_v6 }
 0x3ca   : > { %2830 = vmatpush1.bf16.msra.mxu1 %v4484_v50 }
 0x3cb   : > { %2831 = vmatprep.subr.bf16.mxu1 %v6140_v6  ;;  %v4486_v6 = vld [vmem:[%s6118_s7 + $0x28] sm:$0xff]  }
 0x3ce   : > { %2832 = vmatpush1.bf16.msra.mxu1 %v2813_v29 }
 0x3cf   : > { %3968 = vmatprep.subr.bf16.mxu1 %v4486_v6 }
 0x3d1   : > { %2848 = vmatmul.mubr.bf16.vlgmr.msra.gmra.mrb[48].mxu1 %v5774_v30  ;;  %v4487_v30 = vld [vmem:[%s6118_s7 + $0x30] sm:$0xff]  }
 0x3d2   : > { %3845 = vmatprep.mubr.msk.bf16.mxu1 %vm2241_vm2, %v5803_v7  ;;  %3969 = vmatpush3.bf16.msra.mxu1 %v4486_v6 }
 0x3d3   : > { %3970 = vmatprep.subr.bf16.mxu1 %v4487_v30 }
 0x3d6   : > { %3971 = vmatpush3.bf16.msra.mxu1 %v4487_v30 }
 0x3d7   : > { %3972 = vmatprep.subr.bf16.mxu1 %v4488_v16 }
 0x3d9   : > { %2856 = vmatmul.mubr.bf16.gmra.mrb[52].mxu1 %v5800_v55 }
 0x3da   : > { %3846 = vmatprep.mubr.msk.bf16.mxu1 %vm2241_vm2, %v5835_v13  ;;  %3973 = vmatpush3.bf16.msra.mxu1 %v4488_v16 }
 0x3db   : > { %3974 = vmatprep.subr.bf16.mxu1 %v4489_v56 }
 0x3de   : > { %3975 = vmatpush3.bf16.msra.mxu1 %v4489_v56 }
 0x3df   : > { %3976 = vmatprep.subr.bf16.mxu1 %v4490_v27 }
 0x3e1   : > { %2864 = vmatmul.mubr.bf16.gmra.mrb[56].mxu1 %v5829_v43 }
 0x3e2   : > { %3847 = vmatprep.mubr.msk.bf16.mxu1 %vm2241_vm2, %v2741_v24  ;;  %3977 = vmatpush3.bf16.msra.mxu1 %v4490_v27 }
 0x3e3   : > { %3986 = vmatprep.subr.bf16.mxu1 %v5944_v11 }
 0x3e9   : > { %2872 = vmatmul.mubr.bf16.gmra.mrb[60].mxu1 %v2739_v44 }
 0x45c   : > { %v2544_v26 = vpop.f32.mrb[16].mxu1 }
 0x45d   : > { %v2546_v58 = vpop.f32.mrb[17].mxu1 }
 0x45e   : > { %v2547_v21 = vpop.f32.mrb[18].mxu1 }
 0x45f   : > { %v2549_v22 = vpop.f32.mrb[19].mxu1 }
 0x464   : > { %v2552_v33 = vpop.f32.mrb[20].mxu1 }
 0x465   : > { %v2554_v35 = vpop.f32.mrb[21].mxu1 }
 0x466   : > { %v2555_v48 = vpop.f32.mrb[22].mxu1 }
 0x467   : > { %v2557_v9 = vpop.f32.mrb[23].mxu1 }
 0x46c   : > { %v2560_v1 = vpop.f32.mrb[24].mxu1 }
 0x46d   : > { %v2562_v12 = vpop.f32.mrb[25].mxu1 }
 0x46e   : > { %v2563_v55 = vpop.f32.mrb[26].mxu1 }
 0x46f   : > { %v2565_v5 = vpop.f32.mrb[27].mxu1 }
 0x474   : > { %v2568_v34 = vpop.f32.mrb[28].mxu1 }
 0x475   : > { %v2570_v31 = vpop.f32.mrb[29].mxu1 }
 0x476   : > { %v2571_v7 = vpop.f32.mrb[30].mxu1 }
 0x477   : > { %v2572_v51 = vpop.f32.mrb[31].mxu1 }
 0x480   : > { %v2672_v14 = vpop.f32.mrb[32].mxu1 }
 0x481   : > { %v2673_v25 = vadd.f32 %v2672_v14, %v2544_v26  ;;  %v2674_v23 = vpop.f32.mrb[33].mxu1 }
 0x482   : > { %v2675_v46 = vpop.f32.mrb[34].mxu1 }
 0x483   : > { %v2676_v52 = vadd.f32 %v2675_v46, %v2547_v21  ;;  %v2677_v2 = vpop.f32.mrb[35].mxu1 }
 0x488   : > { %v2680_v39 = vpop.f32.mrb[36].mxu1 }
 0x489   : > { %v2681_v60 = vadd.f32 %v2680_v39, %v2552_v33  ;;  %v2682_v62 = vpop.f32.mrb[37].mxu1 }
 0x48a   : > { %v2683_v49 = vpop.f32.mrb[38].mxu1 }
 0x48b   : > { %v2684_v44 = vadd.f32 %v2683_v49, %v2555_v48  ;;  %v2685_v28 = vpop.f32.mrb[39].mxu1 }
 0x490   : > { %v2688_v24 = vpop.f32.mrb[40].mxu1 }
 0x491   : > { %v2689_v17 = vadd.f32 %v2688_v24, %v2560_v1  ;;  %v2690_v63 = vpop.f32.mrb[41].mxu1 }
 0x492   : > { %v2691_v54 = vpop.f32.mrb[42].mxu1 }
 0x493   : > { %v2692_v61 = vadd.f32 %v2691_v54, %v2563_v55  ;;  %v2693_v43 = vpop.f32.mrb[43].mxu1 }
 0x498   : > { %v2696_v20 = vpop.f32.mrb[44].mxu1 }
 0x499   : > { %v5947_v47 = vadd.f32 %v2696_v20, %v2568_v34  ;;  %v2698_v13 = vpop.f32.mrb[45].mxu1 }
 0x49a   : > { %v2699_v4 = vpop.f32.mrb[46].mxu1 }
 0x49b   : > { %v2700_v0 = vpop.f32.mrb[47].mxu1 }
 0x4a4   : > { %v2849_v19 = vpop.f32.mrb[48].mxu1 }
 0x4a5   : > { %v2879_v53 = vadd.f32 %v2849_v19, %v2673_v25  ;;  %v2851_v36 = vpop.f32.mrb[49].mxu1 }
 0x4a6   : > { %v2852_v15 = vpop.f32.mrb[50].mxu1 }
 0x4a7   : > { %v2894_v32 = vadd.f32 %v5952_v3, %v2879_v53  ;;  %v2880_v37 = vadd.f32 %v2852_v15, %v2676_v52  ;;  %v2854_v59 = vpop.f32.mrb[51].mxu1 }
 0x4a9   : > { %v2908_v41 = vmin.f32 %v2894_v32, 0.0  ;;  %v2895_v38 = vadd.f32 %v5952_v3, %v2880_v37  ;;  %v2901_v8 = vmax.f32 %v2894_v32, 0.0 }
 0x4ab   : > { %v2916_v10 = vmul.f32 %v5955_v45, %v2908_v41  ;;  %v2909_v42 = vmin.f32 %v2895_v38, 0.0  ;;  %v2902_v57 = vmax.f32 %v2895_v38, 0.0 }
 0x4ac   : > { %v2857_v40 = vpop.f32.mrb[52].mxu1 }
 0x4ad   : > { %v2917_v50 = vmul.f32 %v5955_v45, %v2909_v42  ;;  %v2881_v18 = vadd.f32 %v2857_v40, %v2681_v60  ;;  %v2859_v29 = vpop.f32.mrb[53].mxu1  ;;  %v2923_v30 = vadd.f32 %v2916_v10, %v2901_v8 }
 0x4ae   : > { %v2860_v6 = vpop.f32.mrb[54].mxu1 }
 0x4af   : > { %v2924_v16 = vadd.f32 %v2917_v50, %v2902_v57  ;;  %v2896_v56 = vadd.f32 %v5952_v3, %v2881_v18  ;;  %v2882_v27 = vadd.f32 %v2860_v6, %v2684_v44  ;;  %v2862_v26 = vpop.f32.mrb[55].mxu1 }
 0x4b1   : > { %v5961_v58 = vpack.c.bf16 %v2924_v16, %v2923_v30  ;;  %v2910_v21 = vmin.f32 %v2896_v56, 0.0  ;;  %v2897_v22 = vadd.f32 %v5952_v3, %v2882_v27  ;;  %v2903_v1 = vmax.f32 %v2896_v56, 0.0  ;;  %v4493_v56 = vld [vmem:[%s6118_s7 + $0x10] sm:$0xff]  }
 0x4b3   : > { %v2918_v33 = vmul.f32 %v5955_v45, %v2910_v21  ;;  %v2911_v35 = vmin.f32 %v2897_v22, 0.0  ;;  %v2958_v9 = vshll.u32 %v5961_v58, 16  ;;  %v2904_v12 = vmax.f32 %v2897_v22, 0.0 }
 0x4b4   : > { %v2865_v48 = vpop.f32.mrb[56].mxu1  ;;  %v2956_v60 = vshrl.u32 %v5961_v58, 16  ;;  %v3210_v63 = vrot.slane %v5961_v58, 1 }
 0x4b5   : > { %v2919_v55 = vmul.f32 %v5955_v45, %v2911_v35  ;;  %v2883_v5 = vadd.f32 %v2865_v48, %v2689_v17  ;;  %v2867_v34 = vpop.f32.mrb[57].mxu1  ;;  %v2925_v7 = vadd.f32 %v2918_v33, %v2903_v1  ;;  %v2960_v46 = vrot.slane %v2958_v9, 1  ;;  %v4495_v48 = vld [vmem:[%s6118_s7 + $0x20] sm:$0xff]   ;;  %v4496_v9 = vld [vmem:[%s6118_s7 + $0x50] sm:$0xff]   ;;  %v4497_v1 = vld [vmem:[%s6118_s7 + $0x58] sm:$0xff]  }
 0x4b6   : > { %v2868_v31 = vpop.f32.mrb[58].mxu1  ;;  %v4503_v34 = vld [vmem:[%s6121_s10] sm:$0xff]  }
 0x4b7   : > { %v2926_v51 = vadd.f32 %v2919_v55, %v2904_v12  ;;  %v2898_v14 = vadd.f32 %v5952_v3, %v2883_v5  ;;  %v2884_v25 = vadd.f32 %v2868_v31, %v2692_v61  ;;  %v2870_v23 = vpop.f32.mrb[59].mxu1  ;;  %v2961_v17 = vor.u32 %v2960_v46, %v2956_v60  ;;  %v4499_v12 = vld [vmem:[%s6118_s7 + $0x68] sm:$0xff]   ;;  %v4500_v55 = vld [vmem:[%s6118_s7 + $0x70] sm:$0xff]   ;;  %v4501_v5 = vld [vmem:[%s6120_s9] sm:$0xff]   ;;  %4034 = vmatprep.subr.bf16.mxu0 %v4503_v34 }
 0x4b8   : > { %v4504_v31 = vld [vmem:[%s6121_s10 + $0x8] sm:$0xff]   ;;  %4035 = vmatpush3.bf16.msra.mxu0 %v4503_v34 }
 0x4b9   : > { %v5968_v52 = vpack.c.bf16 %v2926_v51, %v2925_v7  ;;  %v2912_v2 = vmin.f32 %v2898_v14, 0.0  ;;  %v2899_v39 = vadd.f32 %v5952_v3, %v2884_v25  ;;  %v2905_v28 = vmax.f32 %v2898_v14, 0.0  ;;  %4036 = vmatprep.subr.bf16.mxu0 %v4504_v31  ;;  %v4505_v7 = vld [vmem:[%s6121_s10 + $0x10] sm:$0xff]   ;;  %v4506_v51 = vld [vmem:[%s6121_s10 + $0x18] sm:$0xff]   ;;  %v4507_v14 = vld [vmem:[%s6121_s10 + $0x20] sm:$0xff]  }
 0x4ba   : > { %v4508_v25 = vld [vmem:[%s6121_s10 + $0x28] sm:$0xff]  }
 0x4bb   : > { %v2920_v62 = vmul.f32 %v5955_v45, %v2912_v2  ;;  %v2913_v49 = vmin.f32 %v2899_v39, 0.0  ;;  %v2963_v44 = vshll.u32 %v5968_v52, 16  ;;  %v3211_v54 = vrot.slane %v5968_v52, 1 }
 0x4bc   : > { %v2873_v24 = vpop.f32.mrb[60].mxu1  ;;  %v2906_v61 = vmax.f32 %v2899_v39, 0.0  ;;  %v2967_v38 = vshrl.u32 %v5968_v52, 16  ;;  %4037 = vmatpush3.bf16.msra.mxu0 %v4504_v31 }
 0x4bd   : > { %v2921_v43 = vmul.f32 %v5955_v45, %v2913_v49  ;;  %v2885_v20 = vadd.f32 %v2873_v24, %v5947_v47  ;;  %v2875_v13 = vpop.f32.mrb[61].mxu1  ;;  %v2965_v4 = vrot.slane %v2963_v44, 1  ;;  %v3212_v19 = vsel %vm1039_vm1, %v3210_v63, %v3211_v54  ;;  %4038 = vmatprep.subr.bf16.mxu0 %v4505_v7 }
 0x4be   : > { %v2876_v0 = vpop.f32.mrb[62].mxu1  ;;  %v2927_v53 = vadd.f32 %v2920_v62, %v2905_v28 }
 0x4bf   : > { %v2928_v36 = vadd.f32 %v2921_v43, %v2906_v61  ;;  %v2900_v15 = vadd.f32 %v5952_v3, %v2885_v20  ;;  %v2877_v32 = vpop.f32.mrb[63].mxu1  ;;  %v2966_v37 = vsel %vm526_vm0, %v2961_v17, %v2965_v4  ;;  %v2969_v57 = vor.u32 %v2967_v38, %v2965_v4  ;;  %v4492_v3 = vld [vmem:[%s6118_s7 + $0x8] sm:$0xff]   ;;  %v3898_v17 = vld [vmem:[%s6119_s8] ss:$0 sm:$0xff] }
 0x4c0   : > { %3978 = vmatprep.mubr.msk.bf16.mxu1 %vm3016_vm6, %v2966_v37  ;;  %4039 = vmatpush3.bf16.msra.mxu0 %v4505_v7  ;;  %v3359_v43 = vstv %s3897_s0 }
 0x4c1   : > { %v2932_v59 = vpack.c.bf16 %v2928_v36, %v2927_v53  ;;  %v2914_v41 = vmin.f32 %v2900_v15, 0.0  ;;  %v2907_v10 = vmax.f32 %v2900_v15, 0.0  ;;  %4040 = vmatprep.subr.bf16.mxu0 %v4506_v51 }
 0x4c3   : > { %v2922_v47 = vmul.f32 %v5955_v45, %v2914_v41  ;;  %v2971_v42 = vshll.u32 %v2932_v59, 16  ;;  %v3213_v40 = vrot.slane %v2932_v59, 1  ;;  %v2975_v30 = vshrl.u32 %v2932_v59, 16 }
 0x4c4   : > { %4041 = vmatpush3.bf16.msra.mxu0 %v4506_v51 }
 0x4c5   : > { %v2929_v8 = vadd.f32 %v2922_v47, %v2907_v10  ;;  %v2973_v50 = vrot.slane %v2971_v42, 1  ;;  %v3214_v18 = vsel %vm1039_vm1, %v3211_v54, %v3213_v40  ;;  %4042 = vmatprep.subr.bf16.mxu0 %v4507_v14 }
 0x4c7   : > { %v2933_v29 = vpack.c.bf16 %v2929_v8, %v2929_v8  ;;  %v2974_v6 = vsel %vm526_vm0, %v2969_v57, %v2973_v50  ;;  %v2977_v27 = vor.u32 %v2975_v30, %v2973_v50 }
 0x4c8   : > { %3979 = vmatmul.mubr.msk.bf16.vlgmr.msra.gmra.mrb[64].mxu1 %vm3016_vm6, %v2974_v6  ;;  %4043 = vmatpush3.bf16.msra.mxu0 %v4507_v14 }
 0x4c9   : > { %3987 = vmatpush3.bf16.msra.mxu1 %v5944_v11  ;;  %v2979_v45 = vshll.u32 %v2933_v29, 16  ;;  %v3215_v16 = vrot.slane %v2933_v29, 1  ;;  %v2983_v21 = vshrl.u32 %v2933_v29, 16  ;;  %v4494_v11 = vld [vmem:[%s6118_s7 + $0x18] sm:$0xff]   ;;  %4044 = vmatprep.subr.bf16.mxu0 %v4508_v25 }
 0x4ca   : > { %3988 = vmatprep.subr.bf16.mxu1 %v4492_v3 }
 0x4cb   : > { %v2981_v26 = vrot.slane %v2979_v45, 1  ;;  %v3216_v22 = vsel %vm1039_vm1, %v3213_v40, %v3215_v16 }
 0x4cc   : > { %4045 = vmatpush3.bf16.msra.mxu0 %v4508_v25 }
 0x4cd   : > { %3989 = vmatpush3.bf16.msra.mxu1 %v4492_v3  ;;  %v2982_v33 = vsel %vm526_vm0, %v2977_v27, %v2981_v26  ;;  %v2985_v35 = vor.u32 %v2983_v21, %v2981_v26 }
 0x4ce   : > { %3982 = vmatprep.mubr.msk.bf16.mxu1 %vm3016_vm6, %v2982_v33  ;;  %3990 = vmatprep.subr.bf16.mxu1 %v4493_v56 }
 0x4d0   : > { %3983 = vmatmul.mubr.msk.bf16.gmra.mrb[68].mxu1 %vm3016_vm6, %v2985_v35 }
 0x4d1   : > { %3991 = vmatpush3.bf16.msra.mxu1 %v4493_v56  ;;  %3996 = vmatprep.mubr.msk.bf16.mxu1 %vm3016_vm6, %v5961_v58  ;;  %v4498_v58 = vld [vmem:[%s6118_s7 + $0x60] sm:$0xff]  }
 0x4d2   : > { %3992 = vmatprep.subr.bf16.mxu1 %v4494_v11 }
 0x4d5   : > { %3993 = vmatpush3.bf16.msra.mxu1 %v4494_v11 }
 0x4d6   : > { %3994 = vmatprep.subr.bf16.mxu1 %v4495_v48 }
 0x4d9   : > { %3995 = vmatpush3.bf16.msra.mxu1 %v4495_v48 }
 0x4da   : > { %4004 = vmatprep.subr.bf16.mxu1 %v4496_v9 }
 0x4dc   : > { %3997 = vmatmul.mubr.msk.bf16.vlgmr.msra.gmra.mrb[64].mxu1 %vm3016_vm6, %v5968_v52 }
 0x4dd   : > { %4000 = vmatprep.mubr.msk.bf16.mxu1 %vm3016_vm6, %v2932_v59  ;;  %4005 = vmatpush3.bf16.msra.mxu1 %v4496_v9 }
 0x4de   : > { %4006 = vmatprep.subr.bf16.mxu1 %v4497_v1 }
 0x4e1   : > { %4007 = vmatpush3.bf16.msra.mxu1 %v4497_v1 }
 0x4e2   : > { %4008 = vmatprep.subr.bf16.mxu1 %v4498_v58 }
 0x4e4   : > { %4001 = vmatmul.mubr.msk.bf16.gmra.mrb[72].mxu1 %vm3016_vm6, %v2933_v29 }
 0x4e5   : > { %4009 = vmatpush3.bf16.msra.mxu1 %v4498_v58  ;;  %4014 = vmatprep.mubr.msk.bf16.mxu1 %vm3016_vm6, %v3212_v19 }
 0x4e6   : > { %4010 = vmatprep.subr.bf16.mxu1 %v4499_v12 }
 0x4e9   : > { %4011 = vmatpush3.bf16.msra.mxu1 %v4499_v12 }
 0x4ea   : > { %4012 = vmatprep.subr.bf16.mxu1 %v4500_v55 }
 0x4ed   : > { %4013 = vmatpush3.bf16.msra.mxu1 %v4500_v55 }
 0x4f0   : > { %4015 = vmatmul.mubr.msk.bf16.vlgmr.msra.gmra.mrb[64].mxu1 %vm3016_vm6, %v3214_v18 }
 0x4f1   : > { %4018 = vmatprep.mubr.msk.bf16.mxu1 %vm3016_vm6, %v3216_v22 }
 0x4f8   : > { %4019 = vmatmul.mubr.msk.bf16.gmra.mrb[76].mxu1 %vm3016_vm6, %v3215_v16 }
 0x4f9   : > { %4030 = vmatprep.mubr.msk.bf16.mxu1 %vm3389_vm7, %v4501_v5 }
 0x5a3   : > { %v3984_v23 = vpop.f32.mrb[68].mxu1 }
 0x5a4   : > { %v3079_v46 = vpop.f32.mrb[69].mxu1 }
 0x5a5   : > { %v3985_v52 = vpop.f32.mrb[70].mxu1 }
 0x5a6   : > { %v3082_v2 = vpop.f32.mrb[71].mxu1 }
 0x5b7   : > { %v4002_v39 = vpop.f32.mrb[72].mxu1 }
 0x5b8   : > { %v3190_v60 = vadd.f32 %v4002_v39, %v3984_v23  ;;  %v3181_v62 = vpop.f32.mrb[73].mxu1  ;;  %v4502_v23 = vld [vmem:[%s6120_s9 + $0x8] ss:$0 sps:$4 sm:$0xff]  }
 0x5b9   : > { %v3182_v49 = vadd.f32 %v3181_v62, %v3079_v46  ;;  %v4003_v44 = vpop.f32.mrb[74].mxu1 }
 0x5ba   : > { %v3184_v28 = vpop.f32.mrb[75].mxu1 }
 0x5bb   : > { %v3185_v24 = vadd.f32 %v3184_v28, %v3082_v2 }
 0x5c3   : > { %v4016_v63 = vpop.f32.mrb[64].mxu1 }
 0x5c4   : > { %v3340_v54 = vadd.f32 %v4016_v63, %v3898_v17  ;;  %v3293_v61 = vpop.f32.mrb[65].mxu1 }
 0x5c5   : > { %v3338_v20 = vadd.f32 %v3898_v17, %v3293_v61  ;;  %v4017_v13 = vpop.f32.mrb[66].mxu1 }
 0x5c6   : > { %v3354_v4 = vmin.f32 %v3340_v54, 0.0  ;;  %v3341_v0 = vadd.f32 %v4017_v13, %v3898_v17  ;;  %v3296_v19 = vpop.f32.mrb[67].mxu1  ;;  %v3347_v41 = vmax.f32 %v3340_v54, 0.0 }
 0x5c7   : > { %v3352_v53 = vmin.f32 %v3338_v20, 0.0  ;;  %v3339_v36 = vadd.f32 %v3898_v17, %v3296_v19  ;;  %v3345_v47 = vmax.f32 %v3338_v20, 0.0 }
 0x5c8   : > { %v3362_v15 = vmul.f32 %v3359_v43, %v3354_v4  ;;  %v3355_v32 = vmin.f32 %v3341_v0, 0.0  ;;  %v3348_v38 = vmax.f32 %v3341_v0, 0.0 }
 0x5c9   : > { %v3360_v37 = vmul.f32 %v3359_v43, %v3352_v53  ;;  %v3353_v59 = vmin.f32 %v3339_v36, 0.0  ;;  %v3346_v42 = vmax.f32 %v3339_v36, 0.0 }
 0x5ca   : > { %v3363_v10 = vmul.f32 %v3359_v43, %v3355_v32  ;;  %v3369_v57 = vadd.f32 %v3362_v15, %v3347_v41 }
 0x5cb   : > { %v3361_v40 = vmul.f32 %v3359_v43, %v3353_v59  ;;  %v4020_v8 = vpop.f32.mrb[76].mxu1  ;;  %v3367_v29 = vadd.f32 %v3360_v37, %v3345_v47 }
 0x5cc   : > { %v3370_v50 = vadd.f32 %v3363_v10, %v3348_v38  ;;  %v3329_v18 = vadd.f32 %v4020_v8, %v3190_v60  ;;  %v3309_v3 = vpop.f32.mrb[77].mxu1 }
 0x5cd   : > { %v3368_v6 = vadd.f32 %v3361_v40, %v3346_v42  ;;  %v3327_v30 = vadd.f32 %v3309_v3, %v3182_v49  ;;  %v4021_v45 = vpop.f32.mrb[78].mxu1  ;;  %v3903_v49 = vld [vmem:[%s6122_s11] ss:$0 sm:$0xff] }
 0x5ce   : > { %v3344_v16 = vadd.f32 %v3898_v17, %v3329_v18  ;;  %v3312_v56 = vpop.f32.mrb[79].mxu1  ;;  %v3378_v27 = vpack.c.bf16 %v3370_v50, %v3369_v57 }
 0x5cf   : > { %v3342_v26 = vadd.f32 %v3898_v17, %v3327_v30  ;;  %v3328_v21 = vadd.f32 %v3312_v56, %v3185_v24  ;;  %v3377_v22 = vpack.c.bf16 %v3368_v6, %v3367_v29 }
 0x5d0   : > { %v3358_v33 = vmin.f32 %v3344_v16, 0.0  ;;  %v3351_v58 = vmax.f32 %v3344_v16, 0.0 }
 0x5d1   : > { %v3356_v35 = vmin.f32 %v3342_v26, 0.0  ;;  %v3343_v11 = vadd.f32 %v3898_v17, %v3328_v21  ;;  %4022 = vmatprep.subr.bf16.mxu1 %v3377_v22  ;;  %v3349_v12 = vmax.f32 %v3342_v26, 0.0 }
 0x5d2   : > { %4023 = vmatpush3.bf16.msra.mxu1 %v3377_v22  ;;  %v3366_v48 = vmul.f32 %v3359_v43, %v3358_v33 }
 0x5d3   : > { %v3364_v9 = vmul.f32 %v3359_v43, %v3356_v35  ;;  %v3357_v1 = vmin.f32 %v3343_v11, 0.0  ;;  %4024 = vmatprep.subr.bf16.mxu1 %v3378_v27  ;;  %v3350_v55 = vmax.f32 %v3343_v11, 0.0 }
 0x5d4   : > { %v3373_v34 = vadd.f32 %v3366_v48, %v3351_v58 }
 0x5d5   : > { %v3365_v5 = vmul.f32 %v3359_v43, %v3357_v1  ;;  %v3371_v31 = vadd.f32 %v3364_v9, %v3349_v12 }
 0x5d6   : > { %4025 = vmatpush3.bf16.msra.mxu1 %v3378_v27  ;;  %v3380_v14 = vpack.c.bf16 %v3373_v34, %v3373_v34 }
 0x5d7   : > { %v3372_v7 = vadd.f32 %v3365_v5, %v3350_v55 }
 0x5d8   : > { %v3398_v25 = vsel %vm3396_vm8, %v3380_v14, 0 }
 0x5d9   : > { %v3379_v51 = vpack.c.bf16 %v3372_v7, %v3371_v31 }
 0x5db   : > { %4026 = vmatprep.subr.bf16.mxu1 %v3379_v51 }
 0x5dc   : > { %4027 = vmatpush3.bf16.msra.mxu1 %v3379_v51 }
 0x5dd   : > { %4130 = vmatprep.subr.msk.bf16.mxu1 %vm3396_vm8, %v3380_v14 }
 0x5e0   : > { %4029 = vmatpush3.bf16.msra.mxu1 %v3398_v25 }
 0x5e3   : > { %4031 = vmatmul.mubr.msk.bf16.vlgmr.msra.gmra.mrb[80].mxu1 %vm3389_vm7, %v4502_v23 }
 0x6b6   : > { %v4032_v46 = vpop.f32.mrb[80].mxu1 }
 0x6b7   : > { %v3434_v52 = vpop.f32.mrb[81].mxu1  ;;  %v3449_v62 = vpack.c.bf16 %v4032_v46, %v4032_v46 }
 0x6b8   : > { %v4033_v2 = vpop.f32.mrb[82].mxu1 }
 0x6b9   : > { %v3437_v39 = vpop.f32.mrb[83].mxu1 }
 0x6ba   : > { %v3448_v60 = vpack.c.bf16 %v3437_v39, %v3434_v52 }
 0x6bc   : > { %4046 = vmatprep.mubr.msk.bf16.mxu0 %vm3505_vm9, %v3448_v60 }
 0x6bd   : > { %4047 = vmatmul.mubr.msk.bf16.vlgmr.msra.gmra.mrb[36].mxu0 %vm3505_vm9, %v3449_v62 }
 0x790   : > { %v4048_v44 = vpop.f32.mrb[36].mxu0 }
 0x791   : > { %v3555_v28 = vadd.f32 %v4048_v44, %v3903_v49  ;;  %v3546_v24 = vpop.f32.mrb[37].mxu0 }
 0x792   : > { %v4049_v17 = vpop.f32.mrb[38].mxu0  ;;  %v3547_v61 = vadd.f32 %v3903_v49, %v3546_v24 }
 0x793   : > { %v3920_v63 = vpack.c.bf16 %v3555_v28, %v3555_v28  ;;  %v3549_v54 = vpop.f32.mrb[39].mxu0 }
 0x794   : > { %v3550_v43 = vadd.f32 %v3903_v49, %v3549_v54 }
 0x795   : > { %3575 = vst [vmem:[%s421_s18 + $0x8] sm:$0xf] %v3920_v63 }
 0x796   : > { %v3925_v20 = vpack.c.bf16 %v3550_v43, %v3547_v61 }
 0x798   : > { %3926 = vst [vmem:[%s421_s18] sm:$0xff] %v3925_v20  }
 0x799   : > { %4537 = shalt.err (!%p4534_p2)
}
 0x79a   : > { %s4538_s16 = scalar_lea.hbm %s6068_s28, 192  ;;  %s4542_s26 = scalar_lea.hbm %s6123_s12, 384 }
 0x79b   : > { %p4539_p3 = scmp.ne.s32.totalorder %s6068_s28, %s4538_s16  ;;  %p4543_p8 = scmp.lt.u32.totalorder %s6068_s28, %s6123_s12 }
 0x79c   : > { %p4544_p9 = scmp.lt.u32.totalorder %s4542_s26, %s4538_s16  ;;  %p4546_p11 = scmp.lt.u32.totalorder %s4538_s16, %s6068_s28 }
 0x79d   : > { %p4540_p4 = pnand %p4539_p3, %p4702_p5 }
 0x79e   : > { %p4545_p10 = por %p4544_p9, %p4543_p8 }
 0x79f   : > { %p4541_p7 = pneg %p4540_p4 }
 0x7a0   : > { %p4547_p12 = por %p4546_p11, %p4545_p10 }
 0x7a2   : > { %p4548_p13 = pnand %p4547_p12, %p4541_p7 }
 0x7a4   : > { %4551 = shalt.err (!%p4548_p13)
}
 0x7a5   : > { %s4597_s25 = smov 64   ;;  %s4598_s30 = smov 4  }
 0x7a6   : > { %4136 = dma.vmem_to_hbm [thread:$0]  (%p4702_p5), %s6063_s19, 192, %s6068_s28, %s6070_s17, %s4597_s25, %s4597_s25, %s4598_s30  }
 0x7a7 PF: > { %p4148_p0 = scmp.ge.s32.totalorder %s4590_s24, 2  ;;  %s3605_s20 = sand.u32 1, %s4578_s21  }
 0x7a8   : > { %s3606_s23 = scalar_lea.sflag [#allocation3], %s3605_s20 }
 0x7a9   : > { %p4143_p1 = pnand %p4148_p0, %p4706_p6 }
 0x7ab   : > { %4573 = dma.done.wait (!%p4143_p1), %s3606_s23, 192  }
 0x7ac   : > { %4575 = vsyncadd (!%p4143_p1), %s3606_s23, 4294967104  ;;  %s6141_s16 = sld [smem:[#allocation8_spill]]  ;;  %s6142_s23 = sld [smem:[#allocation9_spill]] }
 0x7ad   : > { %p23_p2 = scmp.ge.s32.totalorder %s4689_s27, 4   ;;  %s6143_s21 = smov %s4582_s22 }
 0x7ae   : > { %s6145_s24 = smov %s4689_s27 }
 0x7af   :  { %25 = sbr.rel (!%p23_p2) target bundleno = 6 (0x6), region = 114 }
 0x7b2   : > { %s6144_s22 = smov %s6141_s16 }
 0x7b6   :  { %3611 = vsyncpa [#allocation3], 1 }
 0x7b7   :  { %3613 = vsyncpa [#allocation3 + $0x1], 1 }
 0x7b8   :  { %3614 = vsyncpa [#allocation4], 1 }
 0x7b9   :  { %3616 = vsyncpa [#allocation4 + $0x1], 1 }

</bundles_post_ra>
